<compile_context>
chip_gen: v6e
topology: v6e:2x2x1
jax: 0.10.0
libtpu: 0.0.40
codegen_flags: <defaults>
</compile_context>

<pallas_src>
import functools

import jax
import jax.numpy as jnp
from jax.experimental import pallas as pl
from jax.experimental.pallas import tpu as pltpu


# ------------------------------ kernel body -----------------------------------

def _layer_body(x, bias, w_qkv, wo, w1, w2, vecs, qkv_b, b1):
    """One post-LN transformer encoder layer for a single batch row (all VMEM).

    x     : (S, H)   f32 hidden states
    bias  : (1, S)   f32 additive attention-mask bias (0 keep / -1e9 drop)
    w_qkv : (H, 3H)  bf16 (Q columns pre-scaled by 1/sqrt(H))
    wo    : (H, H)   bf16    w1: (H, FFN) bf16    w2: (FFN, H) bf16
    vecs  : (8, H)   f32 packed vectors
            rows: 0 bo, 1 b2, 2 ln1_g, 3 ln1_b, 4 ln2_g, 5 ln2_b
    qkv_b : (1, 3H)  f32 packed q/k/v biases (q part pre-scaled)
    b1    : (1, FFN) f32
    """
    S, H = x.shape
    xb = x.astype(jnp.bfloat16)

    # --- fused QKV projection: one MXU matmul, one bias add, one bf16 cast ---
    qkv = jnp.dot(xb, w_qkv, preferred_element_type=jnp.float32) + qkv_b  # (S,3H)
    qkv = qkv.astype(jnp.bfloat16)
    q = qkv[:, 0 * H:1 * H]
    k = qkv[:, 1 * H:2 * H]
    v = qkv[:, 2 * H:3 * H]

    # --- attention (1/sqrt(H) already folded into W_q / b_q) ---
    scores = jax.lax.dot_general(
        q, k, dimension_numbers=(((1,), (1,)), ((), ())),
        preferred_element_type=jnp.float32) + bias                        # (S,S)
    m = jnp.max(scores, axis=-1, keepdims=True)
    p = jnp.exp(scores - m)
    p = p * pl.reciprocal(jnp.sum(p, axis=-1, keepdims=True), approx=True)  # EUP

    ctx = jnp.dot(p.astype(jnp.bfloat16), v, preferred_element_type=jnp.float32)
    attn = jnp.dot(ctx.astype(jnp.bfloat16), wo,
                   preferred_element_type=jnp.float32) + vecs[0:1, :]

    # --- residual + LayerNorm 1 (single-pass stats, f32) ---
    h = x + attn
    mu = jnp.mean(h, axis=-1, keepdims=True)
    msq = jnp.mean(h * h, axis=-1, keepdims=True)
    var = jnp.maximum(msq - mu * mu, 0.0)
    h = (h - mu) * jax.lax.rsqrt(var + 1e-12) * vecs[2:3, :] + vecs[3:4, :]

    # --- feed-forward ---
    # TODO(synk): PyTorch nn.GELU defaults to exact erf; tanh approximation used here.
    f = jnp.dot(h.astype(jnp.bfloat16), w1, preferred_element_type=jnp.float32) + b1
    f = jax.nn.gelu(f)
    f = jnp.dot(f.astype(jnp.bfloat16), w2,
                preferred_element_type=jnp.float32) + vecs[1:2, :]

    # --- residual + LayerNorm 2 ---
    h2 = h + f
    mu2 = jnp.mean(h2, axis=-1, keepdims=True)
    msq2 = jnp.mean(h2 * h2, axis=-1, keepdims=True)
    var2 = jnp.maximum(msq2 - mu2 * mu2, 0.0)
    h2 = (h2 - mu2) * jax.lax.rsqrt(var2 + 1e-12) * vecs[4:5, :] + vecs[5:6, :]
    return h2


def fused_encoder_cls_kernel(x_ref, bias_ref, w_qkv_ref, wo_ref, w1_ref, w2_ref,
                             vecs_ref, qkv_b_ref, b1_ref, fc_w_ref, fc_b_ref,
                             probs_ref, h_ref):
    """Whole encoder stack + classifier head for one batch row.

    grid = (B, n_layers); the hidden state lives in the (S, H) f32 VMEM scratch
    `h_ref` across the layer axis.  Only the (1, L_pad) probability row is ever
    written to HBM.
    """
    l = pl.program_id(1)

    @pl.when(l == 0)
    def _():
        h_ref[...] = x_ref[0]                      # seed residual stream

    h2 = _layer_body(h_ref[...], bias_ref[0], w_qkv_ref[0], wo_ref[0],
                     w1_ref[0], w2_ref[0], vecs_ref[0], qkv_b_ref[0], b1_ref[0])
    h_ref[...] = h2

    @pl.when(l == pl.num_programs(1) - 1)
    def _():
        # Dropout is identity in eval; fc + softmax on the CLS token.
        cls = h2[0:1, :]                                                  # (1, H)
        logits = jnp.dot(cls.astype(jnp.bfloat16), fc_w_ref[...],
                         preferred_element_type=jnp.float32) + fc_b_ref[...]
        m = jnp.max(logits, axis=-1, keepdims=True)
        e = jnp.exp(logits - m)                    # padded labels: exp(-1e9-m)==0
        probs_ref[0] = e / jnp.sum(e, axis=-1, keepdims=True)   # exact divide


# ------------------------------ pallas wrapper ---------------------------------

def run_encoder_classifier(x, bias, stacked, fc_w, fc_b):
    """x: (B,S,H) f32, bias: (B,1,S) f32, stacked per-layer weights (L,...)."""
    B, S, H = x.shape
    w_qkv, wo, w1, w2, vecs, qkv_b, b1 = stacked
    n_layers = w_qkv.shape[0]
    l_pad = fc_w.shape[1]

    def batch_map(b, l):
        return (b, 0, 0)

    def layer_map(b, l):
        return (l, 0, 0)

    def const_map(b, l):
        return (0, 0)

    return pl.pallas_call(
        fused_encoder_cls_kernel,
        out_shape=jax.ShapeDtypeStruct((B, 1, l_pad), jnp.float32),
        grid=(B, n_layers),
        in_specs=[
            pl.BlockSpec((1, S, H), batch_map),                 # x (seed, l==0)
            pl.BlockSpec((1, 1, S), batch_map),                 # mask bias
            pl.BlockSpec((1,) + w_qkv.shape[1:], layer_map),    # (1, H, 3H)
            pl.BlockSpec((1,) + wo.shape[1:], layer_map),       # (1, H, H)
            pl.BlockSpec((1,) + w1.shape[1:], layer_map),       # (1, H, FFN)
            pl.BlockSpec((1,) + w2.shape[1:], layer_map),       # (1, FFN, H)
            pl.BlockSpec((1,) + vecs.shape[1:], layer_map),     # (1, 8, H)
            pl.BlockSpec((1,) + qkv_b.shape[1:], layer_map),    # (1, 1, 3H)
            pl.BlockSpec((1,) + b1.shape[1:], layer_map),       # (1, 1, FFN)
            pl.BlockSpec(fc_w.shape, const_map),                # (H, L_pad)
            pl.BlockSpec(fc_b.shape, const_map),                # (1, L_pad)
        ],
        out_specs=pl.BlockSpec((1, 1, l_pad), batch_map),       # written at l==last
        scratch_shapes=[pltpu.VMEM((S, H), jnp.float32)],       # residual stream
        compiler_params=pltpu.CompilerParams(
            dimension_semantics=("parallel", "arbitrary"),      # batch x layers
            vmem_limit_bytes=48 * 1024 * 1024,
        ),
    )(x, bias, w_qkv, wo, w1, w2, vecs, qkv_b, b1, fc_w, fc_b)


# ------------------------------ model definition --------------------------------

def _round_up(x, m):
    return ((x + m - 1) // m) * m


def init_params(key, *, vocab, max_seq, hidden, ffn, n_layers, n_labels):
    assert hidden % 128 == 0 and ffn % 128 == 0, "keep lane dims 128-aligned"
    l_pad = _round_up(n_labels, 128)
    keys = jax.random.split(key, 3 + n_layers)
    std = 0.02
    scale = 1.0 / float(hidden) ** 0.5

    # classifier head: zero weights / -1e9 bias on padded label columns
    col = jnp.arange(l_pad)
    fc_w = jax.random.normal(keys[2], (hidden, l_pad), jnp.float32) * std
    fc_w = jnp.where(col[None, :] < n_labels, fc_w, 0.0).astype(jnp.bfloat16)
    fc_b = jnp.where(col < n_labels, 0.0, -1e9).astype(jnp.float32).reshape(1, l_pad)

    w_qkv_l, wo_l, w1_l, w2_l, vecs_l, qkv_b_l, b1_l = [], [], [], [], [], [], []
    for li in range(n_layers):
        lk = jax.random.split(keys[3 + li], 4)
        w_qkv = jax.random.normal(lk[0], (hidden, 3 * hidden), jnp.float32) * std
        # fold the 1/sqrt(H) attention scale into the Q columns (and b_q below)
        w_qkv = w_qkv.at[:, :hidden].multiply(scale)
        w_qkv_l.append(w_qkv.astype(jnp.bfloat16))
        wo_l.append((jax.random.normal(lk[1], (hidden, hidden), jnp.float32)
                     * std).astype(jnp.bfloat16))
        w1_l.append((jax.random.normal(lk[2], (hidden, ffn), jnp.float32)
                     * std).astype(jnp.bfloat16))
        w2_l.append((jax.random.normal(lk[3], (ffn, hidden), jnp.float32)
                     * std).astype(jnp.bfloat16))
        # packed (8, H) f32: 0 bo, 1 b2, 2 ln1_g, 3 ln1_b, 4 ln2_g, 5 ln2_b, pad
        vecs = jnp.zeros((8, hidden), jnp.float32).at[2].set(1.0).at[4].set(1.0)
        vecs_l.append(vecs)
        # packed q/k/v biases (q part would be pre-scaled; zero in synthetic init)
        qkv_b_l.append(jnp.zeros((1, 3 * hidden), jnp.float32))
        b1_l.append(jnp.zeros((1, ffn), jnp.float32))

    params = {
        "word_emb": jax.random.normal(keys[0], (vocab, hidden), jnp.float32) * std,
        "pos_emb": jax.random.normal(keys[1], (max_seq, hidden), jnp.float32) * std,
        "emb_ln_g": jnp.ones((hidden,), jnp.float32),
        "emb_ln_b": jnp.zeros((hidden,), jnp.float32),
        "fc_w": fc_w,                                   # (H, L_pad) bf16
        "fc_b": fc_b,                                   # (1, L_pad) f32
        "stacked": (
            jnp.stack(w_qkv_l),                         # (L, H, 3H)  bf16
            jnp.stack(wo_l),                            # (L, H, H)   bf16
            jnp.stack(w1_l),                            # (L, H, FFN) bf16
            jnp.stack(w2_l),                            # (L, FFN, H) bf16
            jnp.stack(vecs_l),                          # (L, 8, H)   f32
            jnp.stack(qkv_b_l),                         # (L, 1, 3H)  f32
            jnp.stack(b1_l),                            # (L, 1, FFN) f32
        ),
    }
    return params


@functools.partial(jax.jit, static_argnames=("n_labels",))
def forward(params, input_ids, attention_mask, *, n_labels):
    """Matches Model.forward: encoder -> dropout(eval) -> fc -> softmax(CLS)."""
    B, S = input_ids.shape
    # Embedding lookup + LayerNorm (glue in plain JAX).
    x = params["word_emb"][input_ids] + params["pos_emb"][:S][None, :, :]
    mu = jnp.mean(x, axis=-1, keepdims=True)
    var = jnp.mean((x - mu) ** 2, axis=-1, keepdims=True)
    x = (x - mu) * jax.lax.rsqrt(var + 1e-12) * params["emb_ln_g"] + params["emb_ln_b"]

    # Additive attention-mask bias, computed ONCE and reused by every layer.
    bias = jnp.where(attention_mask > 0, 0.0, -1e9).astype(jnp.float32)
    bias = bias.reshape(B, 1, S)

    # Whole encoder + classifier head in a single fused Pallas kernel.
    probs_pad = run_encoder_classifier(x, bias, params["stacked"],
                                       params["fc_w"], params["fc_b"])  # (B,1,L_pad)
    return probs_pad[:, 0, :n_labels]                                    # (B, L)


# ----------------------------------- main ----------------------------------------

if __name__ == "__main__":
    B, S, H, FFN = 2, 16, 128, 256
    VOCAB, N_LAYERS, N_LABELS = 64, 2, 26

    key = jax.random.PRNGKey(0)
    pkey, ikey = jax.random.split(key)
    params = init_params(pkey, vocab=VOCAB, max_seq=S, hidden=H, ffn=FFN,
                         n_layers=N_LAYERS, n_labels=N_LABELS)

    input_ids = jax.random.randint(ikey, (B, S), 0, VOCAB, dtype=jnp.int32)
    attention_mask = jnp.array(
        [[1] * S,                                   # full sequence
         [1] * (S // 2) + [0] * (S - S // 2)],      # padded sequence
        dtype=jnp.int32)

    probs = forward(params, input_ids, attention_mask, n_labels=N_LABELS)
    probs = jax.block_until_ready(probs)

    assert probs.shape == (B, N_LABELS)
    assert bool(jnp.all(jnp.isfinite(probs)))
    assert bool(jnp.allclose(jnp.sum(probs, axis=-1), 1.0, atol=1e-5))
    print("KERNEL_OK")
</pallas_src>

<mosaic_0001>
module attributes {stable_mosaic.version = 11 : i64} {
  func.func @fused_encoder_cls_kernel(%arg0: i32, %arg1: i32, %arg2: memref<1x16x128xf32, #tpu.memory_space<vmem>>, %arg3: memref<1x1x16xf32, #tpu.memory_space<vmem>>, %arg4: memref<1x128x384xbf16, #tpu.memory_space<vmem>>, %arg5: memref<1x128x128xbf16, #tpu.memory_space<vmem>>, %arg6: memref<1x128x256xbf16, #tpu.memory_space<vmem>>, %arg7: memref<1x256x128xbf16, #tpu.memory_space<vmem>>, %arg8: memref<1x8x128xf32, #tpu.memory_space<vmem>>, %arg9: memref<1x1x384xf32, #tpu.memory_space<vmem>>, %arg10: memref<1x1x256xf32, #tpu.memory_space<vmem>>, %arg11: memref<128x128xbf16, #tpu.memory_space<vmem>>, %arg12: memref<1x128xf32, #tpu.memory_space<vmem>>, %arg13: memref<1x1x128xf32, #tpu.memory_space<vmem>>, %arg14: memref<16x128xf32, #tpu.memory_space<vmem>>) attributes {dimension_semantics = [#tpu.dimension_semantics<parallel>, #tpu.dimension_semantics<arbitrary>], iteration_bounds = array<i64: 2, 2>, scalar_prefetch = 0 : i64, scratch_operands = 1 : i64, tpu.core_type = #tpu.core_type<tc>, window_params = [{transform_indices = @transform_0, window_bounds = array<i64: 1, 16, 128>}, {transform_indices = @transform_1, window_bounds = array<i64: 1, 1, 16>}, {transform_indices = @transform_2, window_bounds = array<i64: 1, 128, 384>}, {transform_indices = @transform_3, window_bounds = array<i64: 1, 128, 128>}, {transform_indices = @transform_4, window_bounds = array<i64: 1, 128, 256>}, {transform_indices = @transform_5, window_bounds = array<i64: 1, 256, 128>}, {transform_indices = @transform_6, window_bounds = array<i64: 1, 8, 128>}, {transform_indices = @transform_7, window_bounds = array<i64: 1, 1, 384>}, {transform_indices = @transform_8, window_bounds = array<i64: 1, 1, 256>}, {pipeline_mode = #tpu.pipeline_mode<synchronous>, transform_indices = @transform_9, window_bounds = array<i64: 128, 128>}, {pipeline_mode = #tpu.pipeline_mode<synchronous>, transform_indices = @transform_10, window_bounds = array<i64: 1, 128>}, {transform_indices = @transform_11, window_bounds = array<i64: 1, 1, 128>}]} {
    %c0_i32 = arith.constant 0 : i32
    %0 = arith.cmpi eq, %arg1, %c0_i32 : i32
    %1 = arith.extui %0 : i1 to i32
    %c0_i32_0 = arith.constant 0 : i32
    %2 = arith.cmpi ne, %1, %c0_i32_0 : i32
    scf.if %2 {
      %c0_52 = arith.constant 0 : index
      %c0_53 = arith.constant 0 : index
      %c0_54 = arith.constant 0 : index
      %128 = vector.load %arg2[%c0_52, %c0_53, %c0_54] : memref<1x16x128xf32, #tpu.memory_space<vmem>>, vector<1x16x128xf32>
      %129 = vector.shape_cast %128 : vector<1x16x128xf32> to vector<16x128xf32>
      %c0_55 = arith.constant 0 : index
      %c0_56 = arith.constant 0 : index
      %130 = vector.load %arg14[%c0_55, %c0_56] : memref<16x128xf32, #tpu.memory_space<vmem>>, vector<16x128xf32>
      tpu.vector_store %arg14[%c0_55, %c0_56], %129 {strides = array<i32>} : memref<16x128xf32, #tpu.memory_space<vmem>>, vector<16x128xf32>,
    } else {
    }
    %c0 = arith.constant 0 : index
    %c0_1 = arith.constant 0 : index
    %3 = vector.load %arg14[%c0, %c0_1] : memref<16x128xf32, #tpu.memory_space<vmem>>, vector<16x128xf32>
    %c0_2 = arith.constant 0 : index
    %c0_3 = arith.constant 0 : index
    %c0_4 = arith.constant 0 : index
    %4 = vector.load %arg3[%c0_2, %c0_3, %c0_4] : memref<1x1x16xf32, #tpu.memory_space<vmem>>, vector<1x1x16xf32>
    %5 = vector.shape_cast %4 : vector<1x1x16xf32> to vector<1x16xf32>
    %c0_5 = arith.constant 0 : index
    %c0_6 = arith.constant 0 : index
    %c0_7 = arith.constant 0 : index
    %6 = vector.load %arg4[%c0_5, %c0_6, %c0_7] : memref<1x128x384xbf16, #tpu.memory_space<vmem>>, vector<1x128x384xbf16>
    %7 = vector.shape_cast %6 : vector<1x128x384xbf16> to vector<128x384xbf16>
    %c0_8 = arith.constant 0 : index
    %c0_9 = arith.constant 0 : index
    %c0_10 = arith.constant 0 : index
    %8 = vector.load %arg5[%c0_8, %c0_9, %c0_10] : memref<1x128x128xbf16, #tpu.memory_space<vmem>>, vector<1x128x128xbf16>
    %9 = vector.shape_cast %8 : vector<1x128x128xbf16> to vector<128x128xbf16>
    %c0_11 = arith.constant 0 : index
    %c0_12 = arith.constant 0 : index
    %c0_13 = arith.constant 0 : index
    %10 = vector.load %arg6[%c0_11, %c0_12, %c0_13] : memref<1x128x256xbf16, #tpu.memory_space<vmem>>, vector<1x128x256xbf16>
    %11 = vector.shape_cast %10 : vector<1x128x256xbf16> to vector<128x256xbf16>
    %c0_14 = arith.constant 0 : index
    %c0_15 = arith.constant 0 : index
    %c0_16 = arith.constant 0 : index
    %12 = vector.load %arg7[%c0_14, %c0_15, %c0_16] : memref<1x256x128xbf16, #tpu.memory_space<vmem>>, vector<1x256x128xbf16>
    %13 = vector.shape_cast %12 : vector<1x256x128xbf16> to vector<256x128xbf16>
    %c0_17 = arith.constant 0 : index
    %c0_18 = arith.constant 0 : index
    %c0_19 = arith.constant 0 : index
    %14 = vector.load %arg8[%c0_17, %c0_18, %c0_19] : memref<1x8x128xf32, #tpu.memory_space<vmem>>, vector<1x8x128xf32>
    %15 = vector.shape_cast %14 : vector<1x8x128xf32> to vector<8x128xf32>
    %c0_20 = arith.constant 0 : index
    %c0_21 = arith.constant 0 : index
    %c0_22 = arith.constant 0 : index
    %16 = vector.load %arg9[%c0_20, %c0_21, %c0_22] : memref<1x1x384xf32, #tpu.memory_space<vmem>>, vector<1x1x384xf32>
    %17 = vector.shape_cast %16 : vector<1x1x384xf32> to vector<1x384xf32>
    %c0_23 = arith.constant 0 : index
    %c0_24 = arith.constant 0 : index
    %c0_25 = arith.constant 0 : index
    %18 = vector.load %arg10[%c0_23, %c0_24, %c0_25] : memref<1x1x256xf32, #tpu.memory_space<vmem>>, vector<1x1x256xf32>
    %19 = vector.shape_cast %18 : vector<1x1x256xf32> to vector<1x256xf32>
    %20 = arith.truncf %3 : vector<16x128xf32> to vector<16x128xbf16>
    %cst = arith.constant dense<0.000000e+00> : vector<16x384xf32>
    %21 = tpu.matmul %20, %7, %cst {dimension_numbers = #tpu.dot_dimension_numbers<[1], [0], [0], [1], [0, 0, 1, 1], [], []>} : vector<16x128xbf16>, vector<128x384xbf16>, vector<16x384xf32> -> vector<16x384xf32>
    %22 = vector.broadcast %17 : vector<1x384xf32> to vector<16x384xf32>
    %23 = arith.addf %21, %22 : vector<16x384xf32>
    %24 = arith.truncf %23 : vector<16x384xf32> to vector<16x384xbf16>
    %25 = vector.extract_strided_slice %24 {offsets = [0, 0], sizes = [16, 128], strides = [1, 1]} : vector<16x384xbf16> to vector<16x128xbf16>
    %26 = vector.extract_strided_slice %24 {offsets = [0, 128], sizes = [16, 128], strides = [1, 1]} : vector<16x384xbf16> to vector<16x128xbf16>
    %27 = vector.extract_strided_slice %24 {offsets = [0, 256], sizes = [16, 128], strides = [1, 1]} : vector<16x384xbf16> to vector<16x128xbf16>
    %cst_26 = arith.constant dense<0.000000e+00> : vector<16x16xf32>
    %28 = tpu.matmul %25, %26, %cst_26 {dimension_numbers = #tpu.dot_dimension_numbers<[1], [1], [0], [0], [0, 0, 1, 0], [], []>} : vector<16x128xbf16>, vector<16x128xbf16>, vector<16x16xf32> -> vector<16x16xf32>
    %29 = vector.broadcast %5 : vector<1x16xf32> to vector<16x16xf32>
    %30 = arith.addf %28, %29 : vector<16x16xf32>
    %cst_27 = arith.constant dense<0xFF800000> : vector<16xf32>
    %31 = vector.multi_reduction <maximumf>, %30, %cst_27 [1] : vector<16x16xf32> to vector<16xf32>
    %32 = vector.shape_cast %31 : vector<16xf32> to vector<16x1xf32>
    %33 = vector.broadcast %32 : vector<16x1xf32> to vector<16x16xf32>
    %34 = arith.subf %30, %33 : vector<16x16xf32>
    %35 = math.exp %34 : vector<16x16xf32>
    %cst_28 = arith.constant dense<0.000000e+00> : vector<16xf32>
    %36 = vector.multi_reduction <add>, %35, %cst_28 [1] : vector<16x16xf32> to vector<16xf32>
    %37 = vector.shape_cast %36 : vector<16xf32> to vector<16x1xf32>
    %38 = tpu.reciprocal %37 {approx = true} : vector<16x1xf32> -> vector<16x1xf32>
    %39 = vector.broadcast %38 : vector<16x1xf32> to vector<16x16xf32>
    %40 = arith.mulf %35, %39 : vector<16x16xf32>
    %41 = arith.truncf %40 : vector<16x16xf32> to vector<16x16xbf16>
    %cst_29 = arith.constant dense<0.000000e+00> : vector<16x128xf32>
    %42 = tpu.matmul %41, %27, %cst_29 {dimension_numbers = #tpu.dot_dimension_numbers<[1], [0], [0], [1], [0, 0, 1, 1], [], []>} : vector<16x16xbf16>, vector<16x128xbf16>, vector<16x128xf32> -> vector<16x128xf32>
    %43 = arith.truncf %42 : vector<16x128xf32> to vector<16x128xbf16>
    %cst_30 = arith.constant dense<0.000000e+00> : vector<16x128xf32>
    %44 = tpu.matmul %43, %9, %cst_30 {dimension_numbers = #tpu.dot_dimension_numbers<[1], [0], [0], [1], [0, 0, 1, 1], [], []>} : vector<16x128xbf16>, vector<128x128xbf16>, vector<16x128xf32> -> vector<16x128xf32>
    %45 = vector.extract_strided_slice %15 {offsets = [0, 0], sizes = [1, 128], strides = [1, 1]} : vector<8x128xf32> to vector<1x128xf32>
    %46 = vector.broadcast %45 : vector<1x128xf32> to vector<16x128xf32>
    %47 = arith.addf %44, %46 : vector<16x128xf32>
    %48 = arith.addf %3, %47 : vector<16x128xf32>
    %cst_31 = arith.constant dense<0.000000e+00> : vector<16xf32>
    %49 = vector.multi_reduction <add>, %48, %cst_31 [1] : vector<16x128xf32> to vector<16xf32>
    %50 = vector.shape_cast %49 : vector<16xf32> to vector<16x1xf32>
    %cst_32 = arith.constant 1.280000e+02 : f32
    %51 = vector.broadcast %cst_32 : f32 to vector<16x1xf32>
    %52 = arith.divf %50, %51 : vector<16x1xf32>
    %53 = arith.mulf %48, %48 : vector<16x128xf32>
    %cst_33 = arith.constant dense<0.000000e+00> : vector<16xf32>
    %54 = vector.multi_reduction <add>, %53, %cst_33 [1] : vector<16x128xf32> to vector<16xf32>
    %55 = vector.shape_cast %54 : vector<16xf32> to vector<16x1xf32>
    %cst_34 = arith.constant 1.280000e+02 : f32
    %56 = vector.broadcast %cst_34 : f32 to vector<16x1xf32>
    %57 = arith.divf %55, %56 : vector<16x1xf32>
    %58 = arith.mulf %52, %52 : vector<16x1xf32>
    %59 = arith.subf %57, %58 : vector<16x1xf32>
    %cst_35 = arith.constant 0.000000e+00 : f32
    %60 = vector.broadcast %cst_35 : f32 to vector<16x1xf32>
    %61 = arith.maximumf %59, %60 : vector<16x1xf32>
    %62 = vector.broadcast %52 : vector<16x1xf32> to vector<16x128xf32>
    %63 = arith.subf %48, %62 : vector<16x128xf32>
    %cst_36 = arith.constant 9.99999996E-13 : f32
    %64 = vector.broadcast %cst_36 : f32 to vector<16x1xf32>
    %65 = arith.addf %61, %64 : vector<16x1xf32>
    %66 = math.rsqrt %65 : vector<16x1xf32>
    %67 = vector.broadcast %66 : vector<16x1xf32> to vector<16x128xf32>
    %68 = arith.mulf %63, %67 : vector<16x128xf32>
    %69 = vector.extract_strided_slice %15 {offsets = [2, 0], sizes = [1, 128], strides = [1, 1]} : vector<8x128xf32> to vector<1x128xf32>
    %70 = vector.broadcast %69 : vector<1x128xf32> to vector<16x128xf32>
    %71 = arith.mulf %68, %70 : vector<16x128xf32>
    %72 = vector.extract_strided_slice %15 {offsets = [3, 0], sizes = [1, 128], strides = [1, 1]} : vector<8x128xf32> to vector<1x128xf32>
    %73 = vector.broadcast %72 : vector<1x128xf32> to vector<16x128xf32>
    %74 = arith.addf %71, %73 : vector<16x128xf32>
    %75 = arith.truncf %74 : vector<16x128xf32> to vector<16x128xbf16>
    %cst_37 = arith.constant dense<0.000000e+00> : vector<16x256xf32>
    %76 = tpu.matmul %75, %11, %cst_37 {dimension_numbers = #tpu.dot_dimension_numbers<[1], [0], [0], [1], [0, 0, 1, 1], [], []>} : vector<16x128xbf16>, vector<128x256xbf16>, vector<16x256xf32> -> vector<16x256xf32>
    %77 = vector.broadcast %19 : vector<1x256xf32> to vector<16x256xf32>
    %78 = arith.addf %76, %77 : vector<16x256xf32>
    %79 = arith.mulf %78, %78 : vector<16x256xf32>
    %80 = arith.mulf %78, %79 : vector<16x256xf32>
    %cst_38 = arith.constant 4.471500e-02 : f32
    %81 = vector.broadcast %cst_38 : f32 to vector<16x256xf32>
    %82 = arith.mulf %81, %80 : vector<16x256xf32>
    %83 = arith.addf %78, %82 : vector<16x256xf32>
    %cst_39 = arith.constant 0.797884583 : f32
    %84 = vector.broadcast %cst_39 : f32 to vector<16x256xf32>
    %85 = arith.mulf %84, %83 : vector<16x256xf32>
    %86 = math.tanh %85 : vector<16x256xf32>
    %cst_40 = arith.constant 1.000000e+00 : f32
    %87 = vector.broadcast %cst_40 : f32 to vector<16x256xf32>
    %88 = arith.addf %87, %86 : vector<16x256xf32>
    %cst_41 = arith.constant 5.000000e-01 : f32
    %89 = vector.broadcast %cst_41 : f32 to vector<16x256xf32>
    %90 = arith.mulf %89, %88 : vector<16x256xf32>
    %91 = arith.mulf %78, %90 : vector<16x256xf32>
    %92 = arith.truncf %91 : vector<16x256xf32> to vector<16x256xbf16>
    %cst_42 = arith.constant dense<0.000000e+00> : vector<16x128xf32>
    %93 = tpu.matmul %92, %13, %cst_42 {dimension_numbers = #tpu.dot_dimension_numbers<[1], [0], [0], [1], [0, 0, 1, 1], [], []>} : vector<16x256xbf16>, vector<256x128xbf16>, vector<16x128xf32> -> vector<16x128xf32>
    %94 = vector.extract_strided_slice %15 {offsets = [1, 0], sizes = [1, 128], strides = [1, 1]} : vector<8x128xf32> to vector<1x128xf32>
    %95 = vector.broadcast %94 : vector<1x128xf32> to vector<16x128xf32>
    %96 = arith.addf %93, %95 : vector<16x128xf32>
    %97 = arith.addf %74, %96 : vector<16x128xf32>
    %cst_43 = arith.constant dense<0.000000e+00> : vector<16xf32>
    %98 = vector.multi_reduction <add>, %97, %cst_43 [1] : vector<16x128xf32> to vector<16xf32>
    %99 = vector.shape_cast %98 : vector<16xf32> to vector<16x1xf32>
    %cst_44 = arith.constant 1.280000e+02 : f32
    %100 = vector.broadcast %cst_44 : f32 to vector<16x1xf32>
    %101 = arith.divf %99, %100 : vector<16x1xf32>
    %102 = arith.mulf %97, %97 : vector<16x128xf32>
    %cst_45 = arith.constant dense<0.000000e+00> : vector<16xf32>
    %103 = vector.multi_reduction <add>, %102, %cst_45 [1] : vector<16x128xf32> to vector<16xf32>
    %104 = vector.shape_cast %103 : vector<16xf32> to vector<16x1xf32>
    %cst_46 = arith.constant 1.280000e+02 : f32
    %105 = vector.broadcast %cst_46 : f32 to vector<16x1xf32>
    %106 = arith.divf %104, %105 : vector<16x1xf32>
    %107 = arith.mulf %101, %101 : vector<16x1xf32>
    %108 = arith.subf %106, %107 : vector<16x1xf32>
    %cst_47 = arith.constant 0.000000e+00 : f32
    %109 = vector.broadcast %cst_47 : f32 to vector<16x1xf32>
    %110 = arith.maximumf %108, %109 : vector<16x1xf32>
    %111 = vector.broadcast %101 : vector<16x1xf32> to vector<16x128xf32>
    %112 = arith.subf %97, %111 : vector<16x128xf32>
    %cst_48 = arith.constant 9.99999996E-13 : f32
    %113 = vector.broadcast %cst_48 : f32 to vector<16x1xf32>
    %114 = arith.addf %110, %113 : vector<16x1xf32>
    %115 = math.rsqrt %114 : vector<16x1xf32>
    %116 = vector.broadcast %115 : vector<16x1xf32> to vector<16x128xf32>
    %117 = arith.mulf %112, %116 : vector<16x128xf32>
    %118 = vector.extract_strided_slice %15 {offsets = [4, 0], sizes = [1, 128], strides = [1, 1]} : vector<8x128xf32> to vector<1x128xf32>
    %119 = vector.broadcast %118 : vector<1x128xf32> to vector<16x128xf32>
    %120 = arith.mulf %117, %119 : vector<16x128xf32>
    %121 = vector.extract_strided_slice %15 {offsets = [5, 0], sizes = [1, 128], strides = [1, 1]} : vector<8x128xf32> to vector<1x128xf32>
    %122 = vector.broadcast %121 : vector<1x128xf32> to vector<16x128xf32>
    %123 = arith.addf %120, %122 : vector<16x128xf32>
    %c0_49 = arith.constant 0 : index
    %c0_50 = arith.constant 0 : index
    %124 = vector.load %arg14[%c0_49, %c0_50] : memref<16x128xf32, #tpu.memory_space<vmem>>, vector<16x128xf32>
    tpu.vector_store %arg14[%c0_49, %c0_50], %123 {strides = array<i32>} : memref<16x128xf32, #tpu.memory_space<vmem>>, vector<16x128xf32>,
    %c1_i32 = arith.constant 1 : i32
    %125 = arith.cmpi eq, %arg1, %c1_i32 : i32
    %126 = arith.extui %125 : i1 to i32
    %c0_i32_51 = arith.constant 0 : i32
    %127 = arith.cmpi ne, %126, %c0_i32_51 : i32
    scf.if %127 {
      %128 = vector.extract_strided_slice %123 {offsets = [0, 0], sizes = [1, 128], strides = [1, 1]} : vector<16x128xf32> to vector<1x128xf32>
      %129 = arith.truncf %128 : vector<1x128xf32> to vector<1x128xbf16>
      %c0_52 = arith.constant 0 : index
      %c0_53 = arith.constant 0 : index
      %130 = vector.load %arg11[%c0_52, %c0_53] : memref<128x128xbf16, #tpu.memory_space<vmem>>, vector<128x128xbf16>
      %cst_54 = arith.constant dense<0.000000e+00> : vector<1x128xf32>
      %131 = tpu.matmul %129, %130, %cst_54 {dimension_numbers = #tpu.dot_dimension_numbers<[1], [0], [0], [1], [0, 0, 1, 1], [], []>} : vector<1x128xbf16>, vector<128x128xbf16>, vector<1x128xf32> -> vector<1x128xf32>
      %c0_55 = arith.constant 0 : index
      %c0_56 = arith.constant 0 : index
      %132 = vector.load %arg12[%c0_55, %c0_56] : memref<1x128xf32, #tpu.memory_space<vmem>>, vector<1x128xf32>
      %133 = arith.addf %131, %132 : vector<1x128xf32>
      %cst_57 = arith.constant dense<0xFF800000> : vector<1xf32>
      %134 = vector.multi_reduction <maximumf>, %133, %cst_57 [1] : vector<1x128xf32> to vector<1xf32>
      %135 = vector.shape_cast %134 : vector<1xf32> to vector<1x1xf32>
      %136 = vector.broadcast %135 : vector<1x1xf32> to vector<1x128xf32>
      %137 = arith.subf %133, %136 : vector<1x128xf32>
      %138 = math.exp %137 : vector<1x128xf32>
      %cst_58 = arith.constant dense<0.000000e+00> : vector<1xf32>
      %139 = vector.multi_reduction <add>, %138, %cst_58 [1] : vector<1x128xf32> to vector<1xf32>
      %140 = vector.shape_cast %139 : vector<1xf32> to vector<1x1xf32>
      %141 = vector.broadcast %140 : vector<1x1xf32> to vector<1x128xf32>
      %142 = arith.divf %138, %141 : vector<1x128xf32>
      %c0_59 = arith.constant 0 : index
      %c0_60 = arith.constant 0 : index
      %c0_61 = arith.constant 0 : index
      %143 = vector.load %arg13[%c0_59, %c0_60, %c0_61] : memref<1x1x128xf32, #tpu.memory_space<vmem>>, vector<1x1x128xf32>
      %144 = vector.shape_cast %143 : vector<1x1x128xf32> to vector<1x128xf32>
      %145 = vector.shape_cast %142 : vector<1x128xf32> to vector<1x1x128xf32>
      tpu.vector_store %arg13[%c0_59, %c0_60, %c0_61], %145 {strides = array<i32>} : memref<1x1x128xf32, #tpu.memory_space<vmem>>, vector<1x1x128xf32>,
    } else {
    }
    return
  }
  func.func @transform_0(%arg0: i32, %arg1: i32) -> (i32, i32, i32) {
    %c0_i32 = arith.constant 0 : i32
    %c0_i32_0 = arith.constant 0 : i32
    %c0_i32_1 = arith.constant 0 : i32
    return %arg0, %c0_i32, %c0_i32_0 : i32, i32, i32
  }
  func.func @transform_1(%arg0: i32, %arg1: i32) -> (i32, i32, i32) {
    %c0_i32 = arith.constant 0 : i32
    %c0_i32_0 = arith.constant 0 : i32
    %c0_i32_1 = arith.constant 0 : i32
    return %arg0, %c0_i32, %c0_i32_0 : i32, i32, i32
  }
  func.func @transform_2(%arg0: i32, %arg1: i32) -> (i32, i32, i32) {
    %c0_i32 = arith.constant 0 : i32
    %c0_i32_0 = arith.constant 0 : i32
    %c0_i32_1 = arith.constant 0 : i32
    return %arg1, %c0_i32, %c0_i32_0 : i32, i32, i32
  }
  func.func @transform_3(%arg0: i32, %arg1: i32) -> (i32, i32, i32) {
    %c0_i32 = arith.constant 0 : i32
    %c0_i32_0 = arith.constant 0 : i32
    %c0_i32_1 = arith.constant 0 : i32
    return %arg1, %c0_i32, %c0_i32_0 : i32, i32, i32
  }
  func.func @transform_4(%arg0: i32, %arg1: i32) -> (i32, i32, i32) {
    %c0_i32 = arith.constant 0 : i32
    %c0_i32_0 = arith.constant 0 : i32
    %c0_i32_1 = arith.constant 0 : i32
    return %arg1, %c0_i32, %c0_i32_0 : i32, i32, i32
  }
  func.func @transform_5(%arg0: i32, %arg1: i32) -> (i32, i32, i32) {
    %c0_i32 = arith.constant 0 : i32
    %c0_i32_0 = arith.constant 0 : i32
    %c0_i32_1 = arith.constant 0 : i32
    return %arg1, %c0_i32, %c0_i32_0 : i32, i32, i32
  }
  func.func @transform_6(%arg0: i32, %arg1: i32) -> (i32, i32, i32) {
    %c0_i32 = arith.constant 0 : i32
    %c0_i32_0 = arith.constant 0 : i32
    %c0_i32_1 = arith.constant 0 : i32
    return %arg1, %c0_i32, %c0_i32_0 : i32, i32, i32
  }
  func.func @transform_7(%arg0: i32, %arg1: i32) -> (i32, i32, i32) {
    %c0_i32 = arith.constant 0 : i32
    %c0_i32_0 = arith.constant 0 : i32
    %c0_i32_1 = arith.constant 0 : i32
    return %arg1, %c0_i32, %c0_i32_0 : i32, i32, i32
  }
  func.func @transform_8(%arg0: i32, %arg1: i32) -> (i32, i32, i32) {
    %c0_i32 = arith.constant 0 : i32
    %c0_i32_0 = arith.constant 0 : i32
    %c0_i32_1 = arith.constant 0 : i32
    return %arg1, %c0_i32, %c0_i32_0 : i32, i32, i32
  }
  func.func @transform_9(%arg0: i32, %arg1: i32) -> (i32, i32) {
    %c0_i32 = arith.constant 0 : i32
    %c0_i32_0 = arith.constant 0 : i32
    %c0_i32_1 = arith.constant 0 : i32
    return %c0_i32, %c0_i32_0 : i32, i32
  }
  func.func @transform_10(%arg0: i32, %arg1: i32) -> (i32, i32) {
    %c0_i32 = arith.constant 0 : i32
    %c0_i32_0 = arith.constant 0 : i32
    %c0_i32_1 = arith.constant 0 : i32
    return %c0_i32, %c0_i32_0 : i32, i32
  }
  func.func @transform_11(%arg0: i32, %arg1: i32) -> (i32, i32, i32) {
    %c0_i32 = arith.constant 0 : i32
    %c0_i32_0 = arith.constant 0 : i32
    %c0_i32_1 = arith.constant 0 : i32
    return %arg0, %c0_i32, %c0_i32_0 : i32, i32, i32
  }
}

</mosaic_0001>

<bundles_post_ra>
// kernel: forward.1
= control target key start
LH: loop header
LB: loop body
LE: loop exit
PB: predicated region body
PF: predicated region fallthrough
CT: control target
= control target key end

     0   :  { %s3097_s0 = inlined_call_operand.vmem [shape: f32[2,16,128], index: 0, kind: input, shape index: {}]   ;;  %s3098_s1 = inlined_call_operand.vmem [shape: f32[2,1,16], index: 1, kind: input, shape index: {}]   ;;  %s3099_s2 = inlined_call_operand.vmem [shape: bf16[2,128,384], index: 2, kind: input, shape index: {}]   ;;  %s3100_s3 = inlined_call_operand.hbm [shape: bf16[2,128,128], index: 3, kind: input, shape index: {}]   ;;  %s3101_s4 = inlined_call_operand.hbm [shape: bf16[2,128,256], index: 4, kind: input, shape index: {}]   ;;  %s3102_s5 = inlined_call_operand.hbm [shape: bf16[2,256,128], index: 5, kind: input, shape index: {}]   ;;  %s3103_s6 = inlined_call_operand.vmem [shape: f32[2,8,128], index: 6, kind: input, shape index: {}]   ;;  %s3104_s7 = inlined_call_operand.vmem [shape: f32[2,1,384], index: 7, kind: input, shape index: {}]   ;;  %s3105_s8 = inlined_call_operand.vmem [shape: f32[2,1,256], index: 8, kind: input, shape index: {}]   ;;  %s3106_s9 = inlined_call_operand.vmem [shape: bf16[128,128], index: 9, kind: input, shape index: {}]   ;;  %s3107_s10 = inlined_call_operand.vmem [shape: f32[1,128], index: 10, kind: input, shape index: {}]   ;;  %s3108_s11 = inlined_call_operand.hbm [shape: f32[2,1,128], index: 11, kind: output, shape index: {}]  }
   0x1   :  { %3124 = sst [smem:[#allocation26_spill]] %s3097_s0 }
   0x2   :  { %3125 = sst [smem:[#allocation27_spill]] %s3100_s3 }
   0x3   :  { %3126 = sst [smem:[#allocation28_spill]] %s3101_s4 }
   0x4   :  { %3127 = sst [smem:[#allocation29_spill]] %s3102_s5 }
   0x5   :  { %3128 = sst [smem:[#allocation30_spill]] %s3103_s6 }
   0x6   :  { %3129 = sst [smem:[#allocation31_spill]] %s3104_s7 }
   0x7   :  { %3130 = sst [smem:[#allocation32_spill]] %s3105_s8 }
   0x8   :  { %3131 = sst [smem:[#allocation33_spill]] %s3106_s9 }
   0x9   :  { %3132 = sst [smem:[#allocation34_spill]] %s3107_s10 }
   0xa   :  { %3133 = sst [smem:[#allocation35_spill]] %s3108_s11 }
   0xb   :  { %16 = vsyncpa [#allocation4], 0 }
   0xc   :  { %18 = vsyncpa [#allocation4 + $0x1], 0 }
   0xd   :  { %19 = vsyncpa [#allocation7], 0 }
   0xe   :  { %21 = vsyncpa [#allocation7 + $0x1], 0 }
   0xf   :  { %22 = vsyncpa [#allocation5], 0 }
  0x10   :  { %24 = vsyncpa [#allocation5 + $0x1], 0  ;;  %s2628_s17 = smov 0   ;;  %s2630_s18 = smov 0  }
  0x11   :  { %s2632_s19 = smov 0   ;;  %s2634_s20 = smov 0  }
  0x12   :  { %s2636_s21 = smov 0   ;;  %s2638_s22 = smov 0  }
  0x13   :  { %s2640_s23 = smov 0   ;;  %s2642_s24 = smov 0  }
  0x14   :  { %s2644_s25 = smov 0   ;;  %s2646_s26 = smov 0  }
  0x15   :  { %s2648_s27 = smov 0  }
  0x16 LB: > { %3134 = sst [smem:[#allocation13_spill]] %s2513_s17  ;;  %s2682_s28 = sadd.s32 4294967295, %s2553_s27   ;;  %s2553_s27 = sphi %s2648_s27, %s30_s27   ;;  %s2549_s26 = sphi %s2646_s26, %s3180_s26   ;;  %s2545_s25 = sphi %s2644_s25, %s3179_s25   ;;  %s2541_s24 = sphi %s2642_s24, %s3178_s24   ;;  %s2537_s23 = sphi %s2640_s23, %s3177_s23   ;;  %s2533_s22 = sphi %s2638_s22, %s3176_s22   ;;  %s2529_s21 = sphi %s2636_s21, %s3175_s21   ;;  %s2525_s20 = sphi %s2634_s20, %s3174_s20   ;;  %s2521_s19 = sphi %s2632_s19, %s3173_s19   ;;  %s2517_s18 = sphi %s2630_s18, %s3182_s18   ;;  %s2513_s17 = sphi %s2628_s17, %s3181_s17  }
  0x17   : > { %3135 = sst [smem:[#allocation14_spill]] %s2521_s19  ;;  %s1877_s29 = sadd.s32 4294967294, %s2553_s27  }
  0x18   : > { %3136 = sst [smem:[#allocation15_spill]] %s2529_s21  ;;  %s39_s30 = sadd.s32 1, %s2545_s25 }
  0x19   : > { %3137 = sst [smem:[#allocation16_spill]] %s2533_s22  ;;  %s42_s12 = sadd.s32 1, %s2549_s26 }
  0x1a   : > { %3138 = sst [smem:[#allocation17_spill]] %s2545_s25  ;;  %p40_p0 = scmp.ge.s32.totalorder %s39_s30, 2 }
  0x1b   : > { %3139 = sst [smem:[#allocation18_spill]] %s2549_s26  ;;  %s127_s13 = sadd.s32 1, %s2533_s22 }
  0x1c   : > { %3140 = sst [smem:[#allocation19_spill]] %s2553_s27  ;;  %p134_p1 = scmp.ne.s32.totalorder %s2533_s22, %s2529_s21 }
  0x1d   : > { %p135_p2 = scmp.eq.s32.totalorder %s2553_s27, 0  ;;  %s3184_s30 = smov (%p40_p0, %s39_s30), 0 }
  0x1e   : > { %3141 = sst [smem:[#allocation20_spill]] %s3184_s30  ;;  %s3186_s12 = smov (!%p40_p0, %s42_s12), %s2549_s26 }
  0x1f   : > { %s124_s14 = ssub.s32 %s2545_s25, %s3184_s30  ;;  %p2696_p3 = por %p135_p2, %p134_p1 }
  0x20   : > { %p44_p4 = scmp.ge.s32.totalorder %s3186_s12, 2  ;;  %p125_p5 = scmp.eq.s32.totalorder %s124_s14, 0 }
  0x21   : > { %p140_p6 = scmp.ne.s32.totalorder %s2529_s21, %s2525_s20  ;;  %p141_p7 = scmp.eq.s32.totalorder %s2682_s28, 0 }
  0x22   : > { %s3188_s12 = smov (%p44_p4, %s3186_s12), 0  ;;  %s325_s10 = sadd.s32 1, %s2521_s19 }
  0x23   : > { %3143 = sst [smem:[#allocation21_spill]] %s3188_s12  ;;  %p2707_p8 = por %p141_p7, %p140_p6 }
  0x24   : > { %s2705_s16 = scalar_select %p125_p5, %s2533_s22, %s127_s13  }
  0x25   : > { %s322_s11 = ssub.s32 %s2549_s26, %s3188_s12  ;;  %p335_p10 = scmp.ne.s32.totalorder %s2521_s19, %s2517_s18 }
  0x26   : > { %3144 = sst [smem:[#allocation22_spill]] %s2705_s16  ;;  %p323_p9 = scmp.eq.s32.totalorder %s322_s11, 0 }
  0x27   : > { %p336_p11 = scmp.eq.s32.totalorder %s2682_s28, 3  ;;  %p341_p13 = scmp.ne.s32.totalorder %s2517_s18, %s2513_s17 }
  0x28   : > { %s2718_s14 = scalar_select %p323_p9, %s2521_s19, %s325_s10  }
  0x29   : > { %p2720_p12 = por %p336_p11, %p335_p10  ;;  %p342_p0 = scmp.eq.s32.totalorder %s1877_s29, 3 }
  0x2a   : > { %3146 = sst [smem:[#allocation23_spill]] %s2718_s14  ;;  %p2130_p1 = scmp.lt.s32.totalorder %s2553_s27, 4 }
  0x2b   : > { %s3147_s20 = scalar_select %p2720_p12, 1, 0 }
  0x2c   : > { %s2728_s13 = sand.u32 1, %s2533_s22   ;;  %p2730_p2 = por %p342_p0, %p341_p13 }
  0x2d   : > { %3148 = sst [smem:[#allocation24_spill]] %s3147_s20  ;;  %s411_s11 = sand.u32 1, %s2553_s27  }
  0x2e   : > { %s3149_s16 = scalar_select %p2730_p2, 1, 0 }
  0x2f   : > { %p2737_p4 = pnand %p2130_p1, %p2696_p3  ;;  %s1883_s10 = sshll.u32 %s2728_s13, 7 }
  0x30   : > { %3150 = sst [smem:[#allocation25_spill]] %s3149_s16  ;;  %s1978_s26 = sshll.u32 %s2545_s25, 11 }
  0x31   : > { %s3152_s4 = sld [smem:[#allocation28_spill]]  ;;  %s415_s19 = scalar_lea.vmem [#allocation6], %s1883_s10 }
  0x32   : > { %s422_s17 = sshll.u32 %s415_s19, 4  ;;  %s2746_s20 = scalar_lea.sflag [#allocation7], %s411_s11  ;;  %s423_s17 = int_to_ptr.vmem [resolvable:$true] %s422_s17 }
  0x33   : > { %p2347_p5 = pneg %p2737_p4  ;;  %s2358_s15 = scalar_lea.vmem %s423_s17, 2048 }
  0x34   : > { %p2359_p3 = scmp.ne.s32.totalorder %s423_s17, %s2358_s15  ;;  %s2555_s16 = smov [#allocation6]  }
  0x35   : > { %s2363_s9 = sshll.u32 %s2555_s16, 4  ;;  %s2364_s9 = int_to_ptr.vmem [resolvable:$false] %s2363_s9 }
  0x36   : > { %p2361_p6 = pnand %p2359_p3, %p2347_p5  ;;  %s2365_s8 = scalar_lea.vmem %s2364_s9, 4096 }
  0x37   : > { %s421_s22 = scalar_lea.hbm %s3152_s4, %s1978_s26  ;;  %p2366_p9 = scmp.lt.s32.totalorder %s423_s17, %s2364_s9 }
  0x38   : > { %p2362_p7 = pneg %p2361_p6  ;;  %p2367_p10 = scmp.lt.s32.totalorder %s2365_s8, %s2358_s15 }
  0x3a   : > { %p2368_p11 = por %p2367_p10, %p2366_p9 }
  0x3c   : > { %p2369_p13 = pnand %p2368_p11, %p2362_p7 }
  0x3e   : > { %2372 = shalt.err (!%p2369_p13)
}
  0x3f   : > { %s2556_s19 = smov 128   ;;  %s2557_s14 = smov 8  }
  0x40   : > { %2122 = dma.hbm_to_vmem [thread:$0]  (!%p2737_p4), %s421_s22, 2048, %s423_s17, %s2746_s20, %s2556_s19, %s2556_s19, %s2557_s14  }
  0x41   : > { %s3153_s5 = sld [smem:[#allocation29_spill]]  ;;  %s436_s8 = scalar_lea.vmem [#allocation8], %s1883_s10 }
  0x42   : > { %s443_s9 = sshll.u32 %s436_s8, 4  ;;  %p1889_p0 = scmp.ge.s32.totalorder %s2553_s27, 1  ;;  %s2761_s9 = int_to_ptr.vmem [resolvable:$true] %s443_s9 }
  0x43   : > { %p472_p1 = scmp.lt.s32.totalorder %s2553_s27, 5  ;;  %s1880_s4 = sshll.u32 %s2728_s13, 6 }
  0x44   : > { %s1977_s7 = sshll.u32 %s2545_s25, 10  ;;  %s3155_s3 = sld [smem:[#allocation27_spill]] }
  0x45   : > { %p2765_p3 = pnand %p1889_p0, %p472_p1  ;;  %s394_s19 = scalar_lea.vmem [#allocation3], %s1880_s4 }
  0x46   : > { %s391_s14 = scalar_lea.sflag [#allocation4], %s2728_s13  ;;  %s2558_s11 = smov [#allocation3]  }
  0x47   : > { %s2759_s29 = scalar_lea.hbm %s3153_s5, %s1978_s26  ;;  %s401_s26 = sshll.u32 %s394_s19, 4  ;;  %s402_s26 = int_to_ptr.vmem [resolvable:$true] %s401_s26 }
  0x48   : > { %s2386_s10 = scalar_lea.vmem %s402_s26, 1024  ;;  %s2391_s16 = sshll.u32 %s2558_s11, 4  ;;  %s2392_s16 = int_to_ptr.vmem [resolvable:$false] %s2391_s16 }
  0x49   : > { %p2387_p6 = scmp.ne.s32.totalorder %s402_s26, %s2386_s10  ;;  %s2393_s8 = scalar_lea.vmem %s2392_s16, 2048 }
  0x4a   : > { %s400_s22 = scalar_lea.hbm %s3155_s3, %s1977_s7  ;;  %p2394_p10 = scmp.lt.s32.totalorder %s402_s26, %s2392_s16 }
  0x4b   : > { %p2389_p7 = pnand %p2387_p6, %p2347_p5  ;;  %p2395_p11 = scmp.lt.s32.totalorder %s2393_s8, %s2386_s10 }
  0x4d   : > { %p2390_p9 = pneg %p2389_p7  ;;  %p2396_p13 = por %p2395_p11, %p2394_p10 }
  0x4f   : > { %p2397_p0 = pnand %p2396_p13, %p2390_p9 }
  0x51   : > { %2400 = shalt.err (!%p2397_p0)
}
  0x52   : > { %s2559_s6 = smov 64   ;;  %s2560_s4 = smov 4  }
  0x53   : > { %2119 = dma.hbm_to_vmem [thread:$0]  (!%p2737_p4), %s400_s22, 1024, %s402_s26, %s391_s14, %s2559_s6, %s2559_s6, %s2560_s4  }
  0x54   : > { %s2414_s7 = scalar_lea.vmem %s2761_s9, 2048  ;;  %s2561_s13 = smov [#allocation8]  }
  0x55   : > { %p2415_p1 = scmp.ne.s32.totalorder %s2761_s9, %s2414_s7  ;;  %s2419_s17 = sshll.u32 %s2561_s13, 4  ;;  %s2420_s17 = int_to_ptr.vmem [resolvable:$false] %s2419_s17 }
  0x56   : > { %s2421_s19 = scalar_lea.vmem %s2420_s17, 4096  ;;  %p2422_p9 = scmp.lt.s32.totalorder %s2761_s9, %s2420_s17 }
  0x57   : > { %p2417_p6 = pnand %p2415_p1, %p2347_p5  ;;  %p2423_p10 = scmp.lt.s32.totalorder %s2421_s19, %s2414_s7 }
  0x59   : > { %p2418_p7 = pneg %p2417_p6  ;;  %p2424_p11 = por %p2423_p10, %p2422_p9 }
  0x5b   : > { %p2425_p13 = pnand %p2424_p11, %p2418_p7 }
  0x5d   : > { %2428 = shalt.err (!%p2425_p13)
}
  0x5e   : > { %2125 = dma.hbm_to_vmem [thread:$0]  (!%p2737_p4), %s2759_s29, 2048, %s2761_s9, %s2746_s20, %s2559_s6, %s2559_s6, %s2560_s4  }
  0x5f   : > { %476 = sbr.rel (%p2765_p3) target bundleno = 2628 (0xa44), region = 64  ;;  %s478_s22 = sand.u32 (!%p2765_p3), 1, %s2529_s21  }
  0x60   : > { %s1890_s26 = sshll.u32 (!%p2765_p3), %s478_s22, 6  ;;  %s479_s14 = scalar_lea.sflag (!%p2765_p3), [#allocation4], %s478_s22 }
  0x61   : > { %s2794_s10 = scalar_lea.vmem (!%p2765_p3), [#allocation3], %s1890_s26 }
  0x64   : > { %2500 = dma.done.wait (%p2707_p8), %s479_s14, 1024  }
  0x65   : > { %2502 = vsyncadd (%p2707_p8), %s479_s14, 4294966272  ;;  %s487_s12 = sand.u32 1, %s2682_s28   ;;  %s1891_s11 = sshll.u32 %s478_s22, 7 }
  0x66   : > { %s488_s20 = scalar_lea.sflag [#allocation7], %s487_s12  ;;  %s2801_s29 = scalar_lea.vmem [#allocation6], %s1891_s11 }
  0x67   : > { %2504 = dma.done.wait (%p2707_p8), %s488_s20, 4096  }
  0x68   : > { %2506 = vsyncadd (%p2707_p8), %s488_s20, 4294963200  ;;  %p573_p4 = scmp.lt.s32.totalorder %s2541_s24, 1  ;;  %p581_p5 = scmp.lt.s32.totalorder %s2537_s23, 1 }
  0x69   : > { %s3156_s0 = sld [smem:[#allocation26_spill]]  ;;  %s2842_s27 = scalar_lea.vmem [#allocation8], %s1891_s11 }
  0x6a   : > { %s2811_s15 = scalar_select %p573_p4, %s2541_s24, 1 }
  0x6b   : > { %s582_s28 = scalar_select %p581_p5, %s2537_s23, 1 }
  0x6c   : > { %s1980_s16 = sshll.u32 %s2811_s15, 4  ;;  %s3157_s3 = sld [smem:[#allocation30_spill]] }
  0x6d   : > { %s2106_s17 = smul.u32 192, %s582_s28  ;;  %s1896_s19 = sshll.u32 %s582_s28, 3 }
  0x6e   : > { %s2107_s22 = smul.u32 3, %s582_s28  ;;  %s3158_s6 = sld [smem:[#allocation31_spill]] }
  0x6f   : > { %s577_s13 = scalar_lea.vmem %s3156_s0, %s1980_s16  ;;  %s2825_s12 = scalar_lea.vmem %s3099_s2, %s2106_s17 }
  0x70   : > { %s1897_s4 = sshll.u32 %s582_s28, 1  ;;  %s3159_s0 = sld [smem:[#allocation32_spill]] }
  0x71   : > { %s3160_s17 = sand.u32 1, %s2517_s18   ;;  %p1898_p8 = scmp.ne.s32.totalorder %s2537_s23, 0 }
  0x72   : > { %s2830_s5 = scalar_lea.vmem %s3157_s3, %s1896_s19  ;;  %s2846_s26 = scalar_lea.vmem [#allocation9], %s3160_s17 }
  0x73   : > { %602 = sbr.rel (%p1898_p8) target bundleno = 122 (0x7a), region = 80 }
  0x74   : > { %s2835_s30 = scalar_lea.vmem %s3158_s6, %s2107_s22 }
  0x76   : > { %s2840_s21 = scalar_lea.vmem %s3159_s0, %s1897_s4 }
  0x78   : > { %v603_v0 = vld [vmem:[%s577_s13] sm:$0xff]  ;;  %v604_v1 = vld [vmem:[%s577_s13 + $0x8] sm:$0xff] }
  0x79   : > { %605 = vst [vmem:[#allocation2] sm:$0xff] %v603_v0  ;;  %606 = vst [vmem:[#allocation2 + $0x8] sm:$0xff] %v604_v1 }
  0x7a PF: > { %v2229_v2 = vld [vmem:[%s2825_s12 + $0xac] ss:$12 sps:$4 sm:$0xff]   ;;  %v2231_v3 = vld [vmem:[%s2825_s12 + $0xa8] ss:$12 sps:$4 sm:$0xff]   ;;  %v2562_v4 = vmov 0   ;;  %v2563_v5 = vmov 0.0   ;;  %v711_v31 = vlaneseq  ;;  %s3161_s25 = scalar_lea.vmem %s3098_s1, %s2811_s15 }
  0x7b   : > { %886 = vmatprep.mubr.bf16.mxu0 %v2562_v4  ;;  %2034 = vmatprep.subr.bf16.mxu1 %v2563_v5  ;;  %v2232_v6 = vld [vmem:[%s2825_s12 + $0x94] ss:$12 sps:$4 sm:$0xff]   ;;  %v2234_v7 = vld [vmem:[%s2825_s12 + $0x90] ss:$12 sps:$4 sm:$0xff]   ;;  %v2237_v9 = vld [vmem:[%s2825_s12 + $0x78] ss:$12 sps:$4 sm:$0xff]  }
  0x7c   : > { %854 = vmatprep.subr.bf16.mxu0 %v2229_v2  ;;  %v2235_v8 = vld [vmem:[%s2825_s12 + $0x7c] ss:$12 sps:$4 sm:$0xff]   ;;  %v2238_v10 = vld [vmem:[%s2825_s12 + $0x64] ss:$12 sps:$4 sm:$0xff]   ;;  %v2240_v11 = vld [vmem:[%s2825_s12 + $0x60] ss:$12 sps:$4 sm:$0xff]  }
  0x7d   : > { %855 = vmatpush1.bf16.msra.mxu0 %v2231_v3  ;;  %v2241_v12 = vld [vmem:[%s2825_s12 + $0x4c] ss:$12 sps:$4 sm:$0xff]   ;;  %v2253_v13 = vld [vmem:[%s2825_s12 + $0xb0] ss:$12 sps:$4 sm:$0xff]   ;;  %v2243_v15 = vld [vmem:[%s2825_s12 + $0x48] ss:$12 sps:$4 sm:$0xff]  }
  0x7e   : > { %856 = vmatprep.subr.bf16.mxu0 %v2232_v6  ;;  %2035 = vmatpush3.bf16.msra.mxu1 %v2253_v13  ;;  %v2254_v14 = vld [vmem:[%s2825_s12 + $0x98] ss:$12 sps:$4 sm:$0xff]   ;;  %v2244_v16 = vld [vmem:[%s2825_s12 + $0x34] ss:$12 sps:$4 sm:$0xff]   ;;  %v2246_v17 = vld [vmem:[%s2825_s12 + $0x30] ss:$12 sps:$4 sm:$0xff]  }
  0x7f   : > { %2036 = vmatprep.subr.bf16.mxu1 %v2563_v5  ;;  %v2247_v18 = vld [vmem:[%s2825_s12 + $0x1c] ss:$12 sps:$4 sm:$0xff]   ;;  %v2255_v19 = vld [vmem:[%s2825_s12 + $0x80] ss:$12 sps:$4 sm:$0xff]   ;;  %v2249_v21 = vld [vmem:[%s2825_s12 + $0x18] ss:$12 sps:$4 sm:$0xff]  }
  0x80   : > { %v2256_v20 = vld [vmem:[%s2825_s12 + $0x68] ss:$12 sps:$4 sm:$0xff]   ;;  %v2250_v22 = vld [vmem:[%s2825_s12 + $0x4] ss:$12 sps:$4 sm:$0xff]   ;;  %v2252_v24 = vld [vmem:[%s2825_s12] ss:$12 sps:$4 sm:$0xff]  }
  0x81   : > { %857 = vmatpush1.bf16.msra.mxu0 %v2234_v7  ;;  %v2257_v23 = vld [vmem:[%s2825_s12 + $0x50] ss:$12 sps:$4 sm:$0xff]   ;;  %v2875_v25 = vld [vmem:[#allocation2] sm:$0xff]  ;;  %v2877_v26 = vld [vmem:[#allocation2 + $0x8] sm:$0xff]  ;;  %vm2564_vm0 = vmmov 0   ;;  %v2896_v32 = vshrl.u32 %v711_v31, 7 }
  0x82   : > { %858 = vmatprep.subr.bf16.mxu0 %v2235_v8  ;;  %2037 = vmatpush3.bf16.msra.mxu1 %v2254_v14  ;;  %v2258_v27 = vld [vmem:[%s2825_s12 + $0x38] ss:$12 sps:$4 sm:$0xff]   ;;  %v709_v28 = vpack.c.bf16 %v2877_v26, %v2875_v25  ;;  %v2259_v29 = vld [vmem:[%s2825_s12 + $0x20] ss:$12 sps:$4 sm:$0xff]   ;;  %v2260_v30 = vld [vmem:[%s2825_s12 + $0x8] ss:$12 sps:$4 sm:$0xff]  }
  0x83   : > { %2038 = vmatprep.subr.bf16.mxu1 %v2563_v5  ;;  %2050 = vmatprep.mubr.msk.bf16.mxu1 %vm2564_vm0, %v2563_v5  ;;  %v2899_v33 = vsub.s32 1, %v2896_v32  ;;  %v707_v35 = vld [vmem:[%s2835_s30] sm:$0x7]  ;;  %v2904_v39 = vsub.s32 0, %v2896_v32  ;;  %v721_v48 = vsub.s32 2, %v2896_v32  ;;  %vm988_vm1 = vcmask 130048  }
  0x84   : > { %v1923_v57 = vld [vmem:[%s3161_s25] ss:$0 sm:$0xff]  ;;  %v2261_v14 = vld [vmem:[%s2794_s10 + $0x38] sm:$0xff]   ;;  %p1965_p3 = scmp.ne.s32.totalorder %s2537_s23, 1 }
  0x85   : > { %859 = vmatpush1.bf16.msra.mxu0 %v2237_v9  ;;  %v718_v37 = vrot.slane %v707_v35, %v2899_v33  ;;  %v714_v44 = vrot.slane %v707_v35, %v2904_v39  ;;  %v722_v49 = vrot.slane %v707_v35, %v721_v48  ;;  %s3164_s16 = sld [smem:[#allocation34_spill]] (!%p1965_p3) }
  0x86   : > { %860 = vmatprep.subr.bf16.mxu0 %v2238_v10  ;;  %2039 = vmatpush3.bf16.msra.mxu1 %v2255_v19  ;;  %v2266_v19 = vld [vmem:[%s2794_s10 + $0x10] sm:$0xff]  }
  0x87   : > { %2040 = vmatprep.subr.bf16.mxu1 %v2563_v5 }
  0x89   : > { %861 = vmatpush1.bf16.msra.mxu0 %v2240_v11 }
  0x8a   : > { %862 = vmatprep.subr.bf16.mxu0 %v2241_v12  ;;  %2041 = vmatpush3.bf16.msra.mxu1 %v2256_v20 }
  0x8b   : > { %2042 = vmatprep.subr.bf16.mxu1 %v2563_v5 }
  0x8d   : > { %863 = vmatpush1.bf16.msra.mxu0 %v2243_v15  ;;  %v2262_v15 = vld [vmem:[%s2794_s10 + $0x30] sm:$0xff]  }
  0x8e   : > { %864 = vmatprep.subr.bf16.mxu0 %v2244_v16  ;;  %2043 = vmatpush3.bf16.msra.mxu1 %v2257_v23  ;;  %v2263_v16 = vld [vmem:[%s2794_s10 + $0x28] sm:$0xff]  }
  0x8f   : > { %2044 = vmatprep.subr.bf16.mxu1 %v2563_v5 }
  0x91   : > { %865 = vmatpush1.bf16.msra.mxu0 %v2246_v17  ;;  %v2264_v17 = vld [vmem:[%s2794_s10 + $0x20] sm:$0xff]  }
  0x92   : > { %866 = vmatprep.subr.bf16.mxu0 %v2247_v18  ;;  %2045 = vmatpush3.bf16.msra.mxu1 %v2258_v27  ;;  %v2265_v18 = vld [vmem:[%s2794_s10 + $0x18] sm:$0xff]  }
  0x93   : > { %2046 = vmatprep.subr.bf16.mxu1 %v2563_v5 }
  0x95   : > { %867 = vmatpush1.bf16.msra.mxu0 %v2249_v21 }
  0x96   : > { %868 = vmatprep.subr.bf16.mxu0 %v2250_v22  ;;  %2047 = vmatpush3.bf16.msra.mxu1 %v2259_v29  ;;  %v2267_v29 = vld [vmem:[%s2794_s10 + $0x8] sm:$0xff]  }
  0x97   : > { %2048 = vmatprep.subr.bf16.mxu1 %v2563_v5 }
  0x99   : > { %869 = vmatpush1.bf16.msra.mxu0 %v2252_v24 }
  0x9a   : > { %2066 = vmatprep.subr.bf16.mxu0 %v2563_v5  ;;  %2049 = vmatpush3.bf16.msra.mxu1 %v2260_v30  ;;  %v2268_v30 = vld [vmem:[%s2794_s10] sm:$0xff]  }
  0x9b   : > { %2054 = vmatprep.subr.bf16.mxu1 %v2563_v5 }
  0x9c   : > { %887 = vmatmul.mubr.bf16.vlgmr.msra.gmra.mxu0 %v709_v28 }
  0x9d   : > { %2082 = vmatprep.mubr.msk.bf16.mxu0 %vm2564_vm0, %v2563_v5  ;;  %2051 = vmatmul.mubr.bf16.vlgmr.msra.gmra.mxu1 %v709_v28 }
  0x9e   : > { %2056 = vmatprep.mubr.msk.bf16.mxu1 %vm2564_vm0, %v2563_v5  ;;  %2067 = vmatpush3.bf16.msra.mxu0 %v2261_v14 }
  0x9f   : > { %2068 = vmatprep.subr.bf16.mxu0 %v2563_v5 }
  0xa2   : > { %2069 = vmatpush3.bf16.msra.mxu0 %v2262_v15 }
  0xa3   : > { %2070 = vmatprep.subr.bf16.mxu0 %v2563_v5 }
  0xa6   : > { %2071 = vmatpush3.bf16.msra.mxu0 %v2263_v16 }
  0xa7   : > { %2072 = vmatprep.subr.bf16.mxu0 %v2563_v5 }
  0xaa   : > { %2073 = vmatpush3.bf16.msra.mxu0 %v2264_v17 }
  0xab   : > { %2074 = vmatprep.subr.bf16.mxu0 %v2563_v5 }
  0xae   : > { %2075 = vmatpush3.bf16.msra.mxu0 %v2265_v18 }
  0xaf   : > { %2076 = vmatprep.subr.bf16.mxu0 %v2563_v5 }
  0xb2   : > { %2077 = vmatpush3.bf16.msra.mxu0 %v2266_v19 }
  0xb3   : > { %2078 = vmatprep.subr.bf16.mxu0 %v2563_v5 }
  0xb6   : > { %2079 = vmatpush3.bf16.msra.mxu0 %v2267_v29 }
  0xb7   : > { %2080 = vmatprep.subr.bf16.mxu0 %v2563_v5 }
  0xba   : > { %2081 = vmatpush3.bf16.msra.mxu0 %v2268_v30 }
 0x15c   : > { %v888_v34 = vpop.f32.mrf.mxu0 }
 0x15d   : > { %v889_v46 = vadd.f32 %v888_v34, %v714_v44  ;;  %v931_v50 = vpop.f32.mrf.mxu1 }
 0x15e   : > { %v890_v36 = vpop.f32.mrf.mxu0  ;;  %v932_v52 = vadd.f32 %v931_v50, %v722_v49  ;;  %v2269_v50 = vld [vmem:[%s2801_s29 + $0x70] ss:$8 sps:$4 sm:$0xff]  }
 0x15f   : > { %v891_v41 = vadd.f32 %v890_v36, %v718_v37  ;;  %v2052_v51 = vpop.f32.mrf.mxu1 }
 0x160   : > { %v892_v38 = vpop.f32.mrf.mxu0  ;;  %v2272_v51 = vld [vmem:[%s2801_s29 + $0x60] ss:$8 sps:$4 sm:$0xff]  }
 0x161   : > { %v893_v45 = vadd.f32 %v892_v38, %v714_v44  ;;  %v934_v53 = vpop.f32.mrf.mxu1  ;;  %v2940_v38 = vld [vmem:[%s2830_s5] sm:$0xff] }
 0x162   : > { %v894_v40 = vpop.f32.mrf.mxu0  ;;  %v935_v54 = vadd.f32 %v934_v53, %v722_v49  ;;  %v2271_v49 = vld [vmem:[%s2801_s29 + $0x74] ss:$8 sps:$4 sm:$0xff]   ;;  %v2275_v53 = vld [vmem:[%s2801_s29 + $0x50] ss:$8 sps:$4 sm:$0xff]  }
 0x163   : > { %v895_v42 = vadd.f32 %v894_v40, %v718_v37  ;;  %v938_v47 = vpack.c.bf16 %v893_v45, %v889_v46  ;;  %v2053_v55 = vpop.f32.mrf.mxu1  ;;  %v1060_v40 = vrot.slane %v2940_v38, %v2904_v39 }
 0x164   : > { %v940_v56 = vpack.c.bf16 %v935_v54, %v932_v52  ;;  %v2277_v52 = vld [vmem:[%s2801_s29 + $0x54] ss:$8 sps:$4 sm:$0xff]   ;;  %v2278_v54 = vld [vmem:[%s2801_s29 + $0x40] ss:$8 sps:$4 sm:$0xff]   ;;  %v2280_v55 = vld [vmem:[%s2801_s29 + $0x44] ss:$8 sps:$4 sm:$0xff]  }
 0x165   : > { %v939_v43 = vpack.c.bf16 %v895_v42, %v891_v41 }
 0x167   : > { %2055 = vmatpush3.bf16.xpose.msra.mxu1 %v939_v43 }
 0x168   : > { %2060 = vmatprep.subr.bf16.mxu1 %v2563_v5 }
 0x16e   : > { %2057 = vmatmul.mubr.bf16.vlgmr.msra.gmra.mxu1 %v938_v47 }
 0x16f   : > { %2062 = vmatprep.mubr.msk.bf16.mxu1 %vm2564_vm0, %v2563_v5  ;;  %2061 = vmatpush3.bf16.msra.mxu1 %v940_v56  ;;  %v2283_v56 = vld [vmem:[%s2801_s29 + $0x34] ss:$8 sps:$4 sm:$0xff]  }
 0x170   : > { %1285 = vmatprep.subr.bf16.mxu1 %v2271_v49  ;;  %v2307_v49 = vld [vmem:[%s2842_s27 + $0x40] sm:$0xff]  }
 0x22e   : > { %v981_v58 = vpop.f32.mrf.mxu1 }
 0x22f   : > { %v982_v59 = vadd.f32 %v1923_v57, %v981_v58  ;;  %v2286_v58 = vld [vmem:[%s2801_s29 + $0x24] ss:$8 sps:$4 sm:$0xff]  }
 0x230   : > { %v2058_v60 = vpop.f32.mrf.mxu1 }
 0x231   : > { %v989_v61 = vsel %vm988_vm1, %v982_v59, -inf  ;;  %v2289_v60 = vld [vmem:[%s2801_s29 + $0x14] ss:$8 sps:$4 sm:$0xff]  }
 0x232   : > { %990 = vmax.xlane.f32.xlu0 %v989_v61  ;;  %v984_v62 = vpop.f32.mrf.mxu1  ;;  %v2287_v61 = vld [vmem:[%s2801_s29 + $0x10] ss:$8 sps:$4 sm:$0xff]  }
 0x233   : > { %v985_v63 = vadd.f32 %v1923_v57, %v984_v62  ;;  %v2281_v57 = vld [vmem:[%s2801_s29 + $0x30] ss:$8 sps:$4 sm:$0xff]   ;;  %v2292_v62 = vld [vmem:[%s2801_s29 + $0x4] ss:$8 sps:$4 sm:$0xff]  }
 0x234   : > { %v2059_v0 = vpop.f32.mrf.mxu1 }
 0x235   : > { %v992_v1 = vsel %vm988_vm1, %v985_v63, -inf }
 0x236   : > { %993 = vmax.xlane.f32.xlu0 %v992_v1 }
 0x2bb   : > { %v991_v2 = vpop.xlane.xlu0 %990 }
 0x2bc   : > { %v995_v3 = vsub.f32 %v982_v59, %v991_v2  ;;  %v2284_v59 = vld [vmem:[%s2801_s29 + $0x20] ss:$8 sps:$4 sm:$0xff]  }
 0x2be   : > { %v997_v6 = vmul.f32 1.442695, %v995_v3 }
 0x2bf   : > { %v994_v7 = vpop.xlane.xlu0 %993 }
 0x2c0   : > { %2309 = vpow2.f32 %v997_v6  ;;  %v996_v8 = vsub.f32 %v985_v63, %v994_v7  ;;  %v2290_v63 = vld [vmem:[%s2801_s29] ss:$8 sps:$4 sm:$0xff]  }
 0x2c2   : > { %v999_v9 = vmul.f32 1.442695, %v996_v8 }
 0x2c4   : > { %2311 = vpow2.f32 %v999_v9 }
 0x2cd   : > { %v2310_v10 = vpop.eup %2309 }
 0x2ce   : > { %v1001_v11 = vsel %vm988_vm1, %v2310_v10, 0.0 }
 0x2cf   : > { %1002 = vadd.xlane.f32.xlu1 %v1001_v11 }
 0x2d1   : > { %v2312_v12 = vpop.eup %2311 }
 0x2d2   : > { %v1004_v13 = vsel %vm988_vm1, %v2312_v12, 0.0 }
 0x2d3   : > { %1005 = vadd.xlane.f32.xlu1 %v1004_v13 }
 0x358   : > { %v1003_v20 = vpop.xlane.xlu1 %1002 }
 0x359   : > { %2313 = vrcp.f32 %v1003_v20  ;;  %v1184_v20 = vrot.slane %v2940_v38, %v721_v48 }
 0x35c   : > { %v1006_v21 = vpop.xlane.xlu1 %1005 }
 0x35d   : > { %2315 = vrcp.f32 %v1006_v21 }
 0x366   : > { %v2314_v22 = vpop.eup %2313 }
 0x367   : > { %v1009_v24 = vmul.f32 %v2314_v22, %v2310_v10  ;;  %v1189_v22 = vsub.s32 3, %v2896_v32 }
 0x369   : > { %v1190_v29 = vrot.slane %v2940_v38, %v1189_v22 }
 0x36a   : > { %v2316_v23 = vpop.eup %2315 }
 0x36b   : > { %v1010_v27 = vmul.f32 %v2316_v23, %v2312_v12 }
 0x36d   : > { %v1011_v28 = vpack.c.bf16 %v1010_v27, %v1009_v24 }
 0x36f   : > { %2063 = vmatmul.mubr.msk.bf16.vlgmr.msra.gmra.mxu1 %vm988_vm1, %v1011_v28 }
 0x370   : > { %1317 = vmatprep.mubr.bf16.mxu1 %v2562_v4  ;;  %1286 = vmatpush1.bf16.msra.mxu1 %v2269_v50  ;;  %v2308_v50 = vld [vmem:[%s2842_s27] sm:$0xff]  }
 0x42f   : > { %v1049_v31 = vpop.f32.mrf.mxu1 }
 0x431   : > { %v2064_v34 = vpop.f32.mrf.mxu1 }
 0x433   : > { %v1052_v35 = vpop.f32.mrf.mxu1 }
 0x434   : > { %v1056_v36 = vpack.c.bf16 %v1052_v35, %v1049_v31  ;;  %v2293_v35 = vld [vmem:[%s2842_s27 + $0x78] sm:$0xff]  }
 0x435   : > { %v2065_v37 = vpop.f32.mrf.mxu1  ;;  %2003 = vmatprep.subr.bf16.mxu0 %v2293_v35 }
 0x436   : > { %2083 = vmatmul.mubr.bf16.vlgmr.msra.gmra.mxu0 %v1056_v36  ;;  %v2294_v36 = vld [vmem:[%s2842_s27 + $0x38] sm:$0xff]   ;;  %v2295_v37 = vld [vmem:[%s2842_s27 + $0x70] sm:$0xff]  }
 0x437   : > { %2004 = vmatpush3.bf16.msra.mxu0 %v2294_v36 }
 0x438   : > { %2005 = vmatprep.subr.bf16.mxu0 %v2295_v37 }
 0x4f6   : > { %v1143_v4 = vpop.f32.mrf.mxu0 }
 0x4f7   : > { %v1144_v41 = vadd.f32 %v1143_v4, %v1060_v40  ;;  %v2297_v4 = vld [vmem:[%s2842_s27 + $0x68] sm:$0xff]  }
 0x4f8   : > { %v2084_v42 = vpop.f32.mrf.mxu0 }
 0x4f9   : > { %v2945_v5 = vadd.f32 %v1144_v41, %v2875_v25  ;;  %v2298_v41 = vld [vmem:[%s2842_s27 + $0x28] sm:$0xff]   ;;  %v2299_v42 = vld [vmem:[%s2842_s27 + $0x60] sm:$0xff]  }
 0x4fa   : > { %v1146_v43 = vpop.f32.mrf.mxu0 }
 0x4fb   : > { %v1147_v44 = vadd.f32 %v1146_v43, %v1060_v40  ;;  %1152 = vadd.xlane.f32.xlu0 %v2945_v5  ;;  %v1159_v47 = vmul.f32 %v2945_v5, %v2945_v5  ;;  %v2296_v40 = vld [vmem:[%s2842_s27 + $0x30] sm:$0xff]   ;;  %v2301_v43 = vld [vmem:[%s2842_s27 + $0x58] sm:$0xff]  }
 0x4fc   : > { %v2085_v45 = vpop.f32.mrf.mxu0  ;;  %2006 = vmatpush3.bf16.msra.mxu0 %v2296_v40 }
 0x4fd   : > { %v2949_v46 = vadd.f32 %v1147_v44, %v2877_v26  ;;  %v2274_v26 = vld [vmem:[%s2801_s29 + $0x64] ss:$8 sps:$4 sm:$0xff]   ;;  %2007 = vmatprep.subr.bf16.mxu0 %v2297_v4  ;;  %v2302_v44 = vld [vmem:[%s2842_s27 + $0x18] sm:$0xff]   ;;  %v2303_v45 = vld [vmem:[%s2842_s27 + $0x50] sm:$0xff]  }
 0x4fe   : > { %1287 = vmatprep.subr.bf16.mxu1 %v2274_v26  ;;  %v708_v26 = vld [vmem:[%s2840_s21] sm:$0x3] }
 0x4ff   : > { %1161 = vadd.xlane.f32.xlu0 %v1159_v47  ;;  %1154 = vadd.xlane.f32.xlu1 %v2949_v46  ;;  %v1160_v25 = vmul.f32 %v2949_v46, %v2949_v46  ;;  %v2305_v47 = vld [vmem:[%s2842_s27 + $0x48] sm:$0xff]  }
 0x500   : > { %1288 = vmatpush1.bf16.msra.mxu1 %v2272_v51  ;;  %2008 = vmatpush3.bf16.msra.mxu0 %v2298_v41  ;;  %v1198_v51 = vrot.slane %v708_v26, %v2904_v39 }
 0x501   : > { %1289 = vmatprep.subr.bf16.mxu1 %v2277_v52  ;;  %2009 = vmatprep.subr.bf16.mxu0 %v2299_v42  ;;  %v1202_v52 = vrot.slane %v708_v26, %v2899_v33 }
 0x503   : > { %1163 = vadd.xlane.f32.xlu1 %v1160_v25  ;;  %v2306_v25 = vld [vmem:[%s2842_s27 + $0x8] sm:$0xff]  }
 0x504   : > { %1290 = vmatpush1.bf16.msra.mxu1 %v2275_v53 }
 0x505   : > { %1291 = vmatprep.subr.bf16.mxu1 %v2280_v55 }
 0x508   : > { %1292 = vmatpush1.bf16.msra.mxu1 %v2278_v54 }
 0x509   : > { %1293 = vmatprep.subr.bf16.mxu1 %v2283_v56 }
 0x50c   : > { %1294 = vmatpush1.bf16.msra.mxu1 %v2281_v57 }
 0x50d   : > { %1295 = vmatprep.subr.bf16.mxu1 %v2286_v58 }
 0x510   : > { %1296 = vmatpush1.bf16.msra.mxu1 %v2284_v59 }
 0x511   : > { %1297 = vmatprep.subr.bf16.mxu1 %v2289_v60 }
 0x514   : > { %1298 = vmatpush1.bf16.msra.mxu1 %v2287_v61 }
 0x515   : > { %1299 = vmatprep.subr.bf16.mxu1 %v2292_v62 }
 0x518   : > { %1300 = vmatpush1.bf16.msra.mxu1 %v2290_v63 }
 0x584   : > { %v1153_v0 = vpop.xlane.xlu0 %1152 }
 0x585   : > { %v1157_v1 = vmul.f32 0.0078125, %v1153_v0 }
 0x587   : > { %v1167_v6 = vmul.f32 %v1157_v1, %v1157_v1  ;;  %v1173_v18 = vsub.f32 %v2945_v5, %v1157_v1  ;;  %v2300_v5 = vld [vmem:[%s2842_s27 + $0x20] sm:$0xff]  }
 0x588   : > { %v1162_v2 = vpop.xlane.xlu0 %1161  ;;  %v1155_v3 = vpop.xlane.xlu1 %1154  ;;  %2010 = vmatpush3.bf16.msra.mxu0 %v2300_v5  ;;  %v1369_v5 = vrot.slane %v2940_v38, %v2899_v33 }
 0x589   : > { %v1165_v7 = vmul.f32 0.0078125, %v1162_v2  ;;  %v1158_v8 = vmul.f32 0.0078125, %v1155_v3  ;;  %2011 = vmatprep.subr.bf16.mxu0 %v2301_v43 }
 0x58b   : > { %v1169_v9 = vsub.f32 %v1165_v7, %v1167_v6  ;;  %v1168_v12 = vmul.f32 %v1158_v8, %v1158_v8  ;;  %v1174_v23 = vsub.f32 %v2949_v46, %v1158_v8  ;;  %v2304_v46 = vld [vmem:[%s2842_s27 + $0x10] sm:$0xff]   ;;  %s3162_s27 = sld [smem:[#allocation33_spill]] (!%p1965_p3) }
 0x58c   : > { %v1164_v10 = vpop.xlane.xlu1 %1163  ;;  %2012 = vmatpush3.bf16.msra.mxu0 %v2302_v44 }
 0x58d   : > { %v1171_v11 = vmax.f32 %v1169_v9, 0.0  ;;  %v1166_v13 = vmul.f32 0.0078125, %v1164_v10  ;;  %2013 = vmatprep.subr.bf16.mxu0 %v2303_v45 }
 0x58f   : > { %v1175_v14 = vadd.f32 1e-12, %v1171_v11  ;;  %v1170_v15 = vsub.f32 %v1166_v13, %v1168_v12 }
 0x590   : > { %2014 = vmatpush3.bf16.msra.mxu0 %v2304_v46 }
 0x591   : > { %2317 = vrsqrt.f32 %v1175_v14  ;;  %v1172_v16 = vmax.f32 %v1170_v15, 0.0  ;;  %2015 = vmatprep.subr.bf16.mxu0 %v2305_v47  ;;  %s3163_s10 = smov (!%p1965_p3), %s3162_s27 }
 0x593   : > { %v1176_v17 = vadd.f32 1e-12, %v1172_v16 }
 0x594   : > { %2016 = vmatpush3.bf16.msra.mxu0 %v2306_v25 }
 0x595   : > { %2319 = vrsqrt.f32 %v1176_v17  ;;  %2017 = vmatprep.subr.bf16.mxu0 %v2307_v49 }
 0x598   : > { %2018 = vmatpush3.bf16.msra.mxu0 %v2308_v50 }
 0x59e   : > { %v2318_v19 = vpop.eup %2317 }
 0x59f   : > { %v1179_v21 = vmul.f32 %v2318_v19, %v1173_v18 }
 0x5a1   : > { %v1185_v28 = vmul.f32 %v1184_v20, %v1179_v21 }
 0x5a2   : > { %v2320_v24 = vpop.eup %2319 }
 0x5a3   : > { %v1180_v27 = vmul.f32 %v2320_v24, %v1174_v23  ;;  %v2979_v31 = vadd.f32 %v1190_v29, %v1185_v28 }
 0x5a5   : > { %v1186_v30 = vmul.f32 %v1184_v20, %v1180_v27 }
 0x5a7   : > { %v2981_v34 = vadd.f32 %v1190_v29, %v1186_v30 }
 0x5a9   : > { %v1193_v48 = vpack.c.bf16 %v2981_v34, %v2979_v31 }
 0x5ab   : > { %1318 = vmatmul.mubr.bf16.vlgmr.msra.gmra.mxu1 %v1193_v48 }
 0x66b   : > { %v1319_v53 = vpop.f32.mrf.mxu1 }
 0x66c   : > { %v1320_v54 = vadd.f32 %v1319_v53, %v1198_v51 }
 0x66d   : > { %v1321_v55 = vpop.f32.mrf.mxu1 }
 0x66e   : > { %v1328_v56 = vmul.f32 %v1320_v54, %v1320_v54  ;;  %v1322_v57 = vadd.f32 %v1321_v55, %v1202_v52 }
 0x66f   : > { %v1323_v58 = vpop.f32.mrf.mxu1 }
 0x670   : > { %v1332_v59 = vmul.f32 %v1328_v56, %v1320_v54  ;;  %v1329_v60 = vmul.f32 %v1322_v57, %v1322_v57  ;;  %v1324_v61 = vadd.f32 %v1323_v58, %v1198_v51 }
 0x671   : > { %v1325_v62 = vpop.f32.mrf.mxu1 }
 0x672   : > { %v1336_v63 = vmul.f32 0.044715, %v1332_v59  ;;  %v1333_v0 = vmul.f32 %v1329_v60, %v1322_v57  ;;  %v1330_v1 = vmul.f32 %v1324_v61, %v1324_v61  ;;  %v1326_v2 = vadd.f32 %v1325_v62, %v1202_v52 }
 0x674   : > { %v1340_v3 = vadd.f32 %v1336_v63, %v1320_v54  ;;  %v1337_v6 = vmul.f32 0.044715, %v1333_v0  ;;  %v1334_v7 = vmul.f32 %v1330_v1, %v1324_v61  ;;  %v1331_v39 = vmul.f32 %v1326_v2, %v1326_v2 }
 0x676   : > { %v1344_v8 = vmul.f32 0.7978846, %v1340_v3  ;;  %v1341_v9 = vadd.f32 %v1337_v6, %v1322_v57  ;;  %v1338_v10 = vmul.f32 0.044715, %v1334_v7  ;;  %v1335_v11 = vmul.f32 %v1331_v39, %v1326_v2 }
 0x677   : > { %v1545_v3 = vsub.s32 5, %v2896_v32 }
 0x678   : > { %v1345_v12 = vmul.f32 0.7978846, %v1341_v9  ;;  %v1342_v13 = vadd.f32 %v1338_v10, %v1324_v61  ;;  %v1339_v14 = vmul.f32 0.044715, %v1335_v11  ;;  %2321 = vtanh.f32 %v1344_v8 }
 0x679   : > { %v1546_v8 = vrot.slane %v2940_v38, %v1545_v3 }
 0x67a   : > { %2323 = vtanh.f32 %v1345_v12  ;;  %v1346_v15 = vmul.f32 0.7978846, %v1342_v13  ;;  %v1343_v16 = vadd.f32 %v1339_v14, %v1326_v2 }
 0x67c   : > { %2325 = vtanh.f32 %v1346_v15  ;;  %v1347_v17 = vmul.f32 0.7978846, %v1343_v16 }
 0x67e   : > { %2327 = vtanh.f32 %v1347_v17 }
 0x685   : > { %v2322_v18 = vpop.eup %2321 }
 0x686   : > { %v1352_v22 = vadd.f32 1.0, %v2322_v18 }
 0x687   : > { %v2324_v19 = vpop.eup %2323 }
 0x688   : > { %v1353_v20 = vadd.f32 1.0, %v2324_v19  ;;  %v1356_v30 = vmul.f32 0.5, %v1352_v22 }
 0x689   : > { %v2326_v21 = vpop.eup %2325 }
 0x68a   : > { %v1354_v23 = vadd.f32 1.0, %v2326_v21  ;;  %v1357_v29 = vmul.f32 0.5, %v1353_v20  ;;  %v1360_v40 = vmul.f32 %v1356_v30, %v1320_v54 }
 0x68b   : > { %v2328_v24 = vpop.eup %2327 }
 0x68c   : > { %v1358_v27 = vmul.f32 0.5, %v1354_v23  ;;  %v1355_v28 = vadd.f32 1.0, %v2328_v24  ;;  %v1361_v36 = vmul.f32 %v1357_v29, %v1322_v57 }
 0x68e   : > { %v1359_v48 = vmul.f32 0.5, %v1355_v28  ;;  %v1362_v35 = vmul.f32 %v1358_v27, %v1324_v61 }
 0x690   : > { %v1363_v37 = vmul.f32 %v1359_v48, %v1326_v2  ;;  %v1364_v41 = vpack.c.bf16 %v1362_v35, %v1360_v40  ;;  %v1539_v2 = vsub.s32 4, %v2896_v32 }
 0x692   : > { %v1365_v4 = vpack.c.bf16 %v1363_v37, %v1361_v36  ;;  %v1540_v7 = vrot.slane %v2940_v38, %v1539_v2 }
 0x694   : > { %1498 = vmatprep.mubr.bf16.mxu0 %v1365_v4 }
 0x695   : > { %1499 = vmatmul.mubr.bf16.vlgmr.msra.gmra.mxu0 %v1364_v41 }
 0x755   : > { %v2019_v42 = vpop.f32.mrf.mxu0 }
 0x757   : > { %v2020_v43 = vpop.f32.mrf.mxu0 }
 0x758   : > { %v2021_v44 = vadd.f32 %v2020_v43, %v2019_v42 }
 0x759   : > { %v2022_v45 = vpop.f32.mrf.mxu0 }
 0x75a   : > { %v1501_v46 = vadd.f32 %v2021_v44, %v1369_v5 }
 0x75b   : > { %v2023_v47 = vpop.f32.mrf.mxu0 }
 0x75c   : > { %v2024_v25 = vadd.f32 %v2023_v47, %v2022_v45  ;;  %v1507_v49 = vadd.f32 %v1501_v46, %v2979_v31 }
 0x75e   : > { %v1504_v50 = vadd.f32 %v2024_v25, %v1369_v5  ;;  %1509 = vadd.xlane.f32.xlu0 %v1507_v49  ;;  %v1515_v51 = vmul.f32 %v1507_v49, %v1507_v49 }
 0x760   : > { %v1508_v26 = vadd.f32 %v1504_v50, %v2981_v34 }
 0x762   : > { %1511 = vadd.xlane.f32.xlu1 %v1508_v26  ;;  %1517 = vadd.xlane.f32.xlu0 %v1515_v51  ;;  %v1516_v52 = vmul.f32 %v1508_v26, %v1508_v26 }
 0x766   : > { %1519 = vadd.xlane.f32.xlu1 %v1516_v52 }
 0x7e7   : > { %v1510_v53 = vpop.xlane.xlu0 %1509 }
 0x7e8   : > { %v1513_v54 = vmul.f32 0.0078125, %v1510_v53 }
 0x7ea   : > { %v1523_v56 = vmul.f32 %v1513_v54, %v1513_v54  ;;  %v1529_v6 = vsub.f32 %v1507_v49, %v1513_v54 }
 0x7eb   : > { %v1512_v33 = vpop.xlane.xlu1 %1511  ;;  %v1518_v55 = vpop.xlane.xlu0 %1517 }
 0x7ec   : > { %v1514_v57 = vmul.f32 0.0078125, %v1512_v33  ;;  %v1521_v58 = vmul.f32 0.0078125, %v1518_v55 }
 0x7ee   : > { %v1525_v59 = vsub.f32 %v1521_v58, %v1523_v56  ;;  %v1524_v61 = vmul.f32 %v1514_v57, %v1514_v57  ;;  %v1530_v10 = vsub.f32 %v1508_v26, %v1514_v57 }
 0x7ef   : > { %v1520_v60 = vpop.xlane.xlu1 %1519 }
 0x7f0   : > { %v1527_v31 = vmax.f32 %v1525_v59, 0.0  ;;  %v1522_v62 = vmul.f32 0.0078125, %v1520_v60 }
 0x7f2   : > { %v1531_v63 = vadd.f32 1e-12, %v1527_v31  ;;  %v1526_v0 = vsub.f32 %v1522_v62, %v1524_v61 }
 0x7f4   : > { %2329 = vrsqrt.f32 %v1531_v63  ;;  %v1528_v34 = vmax.f32 %v1526_v0, 0.0 }
 0x7f6   : > { %v1532_v1 = vadd.f32 1e-12, %v1528_v34 }
 0x7f8   : > { %2331 = vrsqrt.f32 %v1532_v1 }
 0x801   : > { %v2330_v39 = vpop.eup %2329 }
 0x802   : > { %v1535_v9 = vmul.f32 %v2330_v39, %v1529_v6 }
 0x804   : > { %v1541_v11 = vmul.f32 %v1540_v7, %v1535_v9 }
 0x805   : > { %v2332_v12 = vpop.eup %2331 }
 0x806   : > { %v1547_v13 = vadd.f32 %v1546_v8, %v1541_v11  ;;  %v1536_v14 = vmul.f32 %v2332_v12, %v1530_v10 }
 0x808   : > { %1549 = vst [vmem:[#allocation2] sm:$0xff] %v1547_v13  ;;  %v1542_v15 = vmul.f32 %v1540_v7, %v1536_v14  ;;  %1554 = sbr.rel (%p1965_p3) target bundleno = 2602 (0xa2a), region = 84 }
 0x80a   : > { %v1548_v16 = vadd.f32 %v1546_v8, %v1542_v15 }
 0x80c   : > { %1550 = vst [vmem:[#allocation2 + $0x8] sm:$0xff] %v1548_v16 }
 0x80d   : > { %v2333_v32 = vld [vmem:[%s3162_s27 + $0x38] sm:$0xff]   ;;  %v2565_v17 = vmov 0.0   ;;  %v2334_v38 = vld [vmem:[%s3163_s10 + $0x30] sm:$0xff]   ;;  %vm2566_vm2 = vmmov 0   ;;  %v2335_v18 = vld [vmem:[%s3163_s10 + $0x28] sm:$0xff]   ;;  %v1555_v24 = vpack.c.bf16 %v1547_v13, %v1547_v13  ;;  %vm1661_vm3 = vcmask 1040384  }
 0x80e   : > { %2086 = vmatprep.subr.bf16.mxu0 %v2565_v17  ;;  %2102 = vmatprep.mubr.msk.bf16.mxu0 %vm2566_vm2, %v2565_v17  ;;  %v2336_v19 = vld [vmem:[%s3163_s10 + $0x20] sm:$0xff]   ;;  %v2337_v20 = vld [vmem:[%s3163_s10 + $0x18] sm:$0xff]   ;;  %v2338_v21 = vld [vmem:[%s3163_s10 + $0x10] sm:$0xff]  }
 0x80f   : > { %2087 = vmatpush3.bf16.msra.mxu0 %v2333_v32  ;;  %v2339_v22 = vld [vmem:[%s3163_s10 + $0x8] sm:$0xff]   ;;  %v2340_v23 = vld [vmem:[%s3163_s10] sm:$0xff]  }
 0x810   : > { %2088 = vmatprep.subr.bf16.mxu0 %v2565_v17  ;;  %v1572_v27 = vld [vmem:[%s3164_s16] sm:$0x1] }
 0x813   : > { %2089 = vmatpush3.bf16.msra.mxu0 %v2334_v38 }
 0x814   : > { %2090 = vmatprep.subr.bf16.mxu0 %v2565_v17 }
 0x817   : > { %2091 = vmatpush3.bf16.msra.mxu0 %v2335_v18 }
 0x818   : > { %2092 = vmatprep.subr.bf16.mxu0 %v2565_v17 }
 0x81b   : > { %2093 = vmatpush3.bf16.msra.mxu0 %v2336_v19 }
 0x81c   : > { %2094 = vmatprep.subr.bf16.mxu0 %v2565_v17 }
 0x81f   : > { %2095 = vmatpush3.bf16.msra.mxu0 %v2337_v20 }
 0x820   : > { %2096 = vmatprep.subr.bf16.mxu0 %v2565_v17 }
 0x823   : > { %2097 = vmatpush3.bf16.msra.mxu0 %v2338_v21 }
 0x824   : > { %2098 = vmatprep.subr.bf16.mxu0 %v2565_v17 }
 0x827   : > { %2099 = vmatpush3.bf16.msra.mxu0 %v2339_v22 }
 0x828   : > { %2100 = vmatprep.subr.bf16.mxu0 %v2565_v17 }
 0x82b   : > { %2101 = vmatpush3.bf16.msra.mxu0 %v2340_v23 }
 0x82e   : > { %2103 = vmatmul.mubr.bf16.vlgmr.msra.gmra.mxu0 %v1555_v24 }
 0x8ee   : > { %v1655_v28 = vpop.f32.mrf.mxu0 }
 0x8ef   : > { %v1656_v29 = vadd.f32 %v1655_v28, %v1572_v27 }
 0x8f0   : > { %v2104_v30 = vpop.f32.mrf.mxu0 }
 0x8f1   : > { %v1662_v48 = vsel %vm1661_vm3, %v1656_v29, -inf }
 0x8f2   : > { %1663 = vmax.xlane.f32.xlu0 %v1662_v48  ;;  %v1658_v35 = vpop.f32.mrf.mxu0 }
 0x8f4   : > { %v2105_v36 = vpop.f32.mrf.mxu0 }
 0x97b   : > { %v1664_v37 = vpop.xlane.xlu0 %1663 }
 0x97c   : > { %v1665_v40 = vsub.f32 %v1656_v29, %v1664_v37 }
 0x97e   : > { %v1666_v4 = vmul.f32 1.442695, %v1665_v40 }
 0x980   : > { %2341 = vpow2.f32 %v1666_v4 }
 0x98d   : > { %v2342_v41 = vpop.eup %2341 }
 0x98e   : > { %v1668_v42 = vsel %vm1661_vm3, %v2342_v41, 0.0 }
 0x98f   : > { %1669 = vadd.xlane.f32.xlu0 %v1668_v42 }
 0xa18   : > { %v1670_v5 = vpop.xlane.xlu0 %1669 }
 0xa19   : > { %2343 = vrcp.f32 %v1670_v5 }
 0xa26   : > { %v2344_v43 = vpop.eup %2343 }
 0xa27   : > { %v1672_v44 = vmul.f32 %v2344_v43, %v2342_v41 }
 0xa29   : > { %1673 = vst [vmem:[%s2846_s26] sm:$0x1] %v1672_v44 }
 0xa2a PF: > { %s1974_s17 = sshll.u32 %s2541_s24, 4  ;;  %s3166_s25 = sld [smem:[#allocation35_spill]] }
 0xa2b   : > { %s1687_s27 = sshll.u32 %s2846_s26, 4  ;;  %s3168_s11 = sand.u32 1, %s2517_s18   ;;  %s1688_s27 = int_to_ptr.vmem [resolvable:$true] %s1687_s27 }
 0xa2c   : > { %s1675_s29 = scalar_lea.sflag [#allocation5], %s3168_s11  ;;  %s2429_s9 = scalar_lea.vmem %s1688_s27, 16 }
 0xa2d   : > { %p2430_p0 = scmp.ne.s32.totalorder %s1688_s27, %s2429_s9  ;;  %s2567_s15 = smov [#allocation9]  }
 0xa2e   : > { %s2433_s23 = sshll.u32 %s2567_s15, 4  ;;  %s2434_s23 = int_to_ptr.vmem [resolvable:$false] %s2433_s23 }
 0xa2f   : > { %p2431_p1 = pnand %p2430_p0, %p2720_p12  ;;  %s2435_s28 = scalar_lea.vmem %s2434_s23, 32 }
 0xa30   : > { %s3167_s5 = smov %s3166_s25  ;;  %s1685_s21 = scalar_lea.hbm %s3166_s25, %s1974_s17 }
 0xa31   : > { %p2432_p6 = pneg %p2431_p1  ;;  %p2436_p7 = scmp.lt.s32.totalorder %s1688_s27, %s2434_s23 }
 0xa32   : > { %p2437_p9 = scmp.lt.s32.totalorder %s2435_s28, %s2429_s9 }
 0xa34   : > { %p2438_p10 = por %p2437_p9, %p2436_p7 }
 0xa36   : > { %p2439_p11 = pnand %p2438_p10, %p2432_p6 }
 0xa38   : > { %2442 = shalt.err (!%p2439_p11)
}
 0xa39   : > { %s2443_s24 = scalar_lea.hbm %s1685_s21, 16  ;;  %s2447_s13 = scalar_lea.hbm %s3167_s5, 32 }
 0xa3a   : > { %p2444_p13 = scmp.ne.s32.totalorder %s1685_s21, %s2443_s24  ;;  %p2448_p8 = scmp.lt.s32.totalorder %s1685_s21, %s3167_s5 }
 0xa3b   : > { %p2449_p3 = scmp.lt.s32.totalorder %s2447_s13, %s2443_s24 }
 0xa3c   : > { %p2445_p4 = pnand %p2444_p13, %p2720_p12 }
 0xa3d   : > { %p2450_p0 = por %p2449_p3, %p2448_p8 }
 0xa3e   : > { %p2446_p5 = pneg %p2445_p4 }
 0xa40   : > { %p2451_p1 = pnand %p2450_p0, %p2446_p5 }
 0xa42   : > { %2454 = shalt.err (!%p2451_p1)
}
 0xa43   : > { %2114 = dma.vmem_to_hbm [thread:$0]  (%p2720_p12), %s1688_s27, 16, %s1685_s21, %s1675_s29  }
 0xa44 PF: > { %s3169_s14 = sld [smem:[#allocation19_spill]] }
 0xa45   : > { %s3170_s12 = sld [smem:[#allocation13_spill]] }
 0xa4a   : > { %p2131_p6 = scmp.ge.s32.totalorder %s3169_s14, 2 }
 0xa4b   : > { %s1699_s8 = sand.u32 1, %s3170_s12  }
 0xa4c   : > { %p2127_p7 = pnand %p2131_p6, %p2730_p2  ;;  %s1700_s6 = scalar_lea.sflag [#allocation5], %s1699_s8 }
 0xa4e   : > { %p2128_p9 = pneg %p2127_p7 }
 0xa50   : > { %2508 = dma.done.wait (%p2128_p9), %s1700_s6, 16  }
 0xa51   : > { %2510 = vsyncadd (%p2128_p9), %s1700_s6, 4294967280  ;;  %s30_s27 = sadd.s32 1, %s3169_s14   ;;  %s3172_s4 = sld [smem:[#allocation14_spill]] }
 0xa52   : > { %p27_p10 = scmp.ge.s32.totalorder %s30_s27, 6   ;;  %s3173_s19 = sld [smem:[#allocation23_spill]] }
 0xa53   : > { %s3174_s20 = sld [smem:[#allocation15_spill]]  ;;  %s3181_s17 = smov %s2517_s18 }
 0xa54   : > { %s3175_s21 = sld [smem:[#allocation16_spill]] }
 0xa55   : > { %s3176_s22 = sld [smem:[#allocation22_spill]]  ;;  %29 = sbr.rel (!%p27_p10) target bundleno = 22 (0x16), region = 159 }
 0xa56   : > { %s3177_s23 = sld [smem:[#allocation17_spill]] }
 0xa57   : > { %s3178_s24 = sld [smem:[#allocation18_spill]]  ;;  %s3182_s18 = smov %s3172_s4 }
 0xa58   : > { %s3179_s25 = sld [smem:[#allocation20_spill]] }
 0xa59   : > { %s3180_s26 = sld [smem:[#allocation21_spill]] }
 0xa5a   :  { %1704 = vsyncpa [#allocation4], 1 }
 0xa5b   :  { %1706 = vsyncpa [#allocation4 + $0x1], 1 }
 0xa5c   :  { %1707 = vsyncpa [#allocation7], 1 }
 0xa5d   :  { %1709 = vsyncpa [#allocation7 + $0x1], 1 }
 0xa5e   :  { %1710 = vsyncpa [#allocation5], 1 }
 0xa5f   :  { %1712 = vsyncpa [#allocation5 + $0x1], 1 }

</bundles_post_ra>
